<compile_context>
chip_gen: v5e
topology: v5e:2x2
jax: 0.10.0
libtpu: 0.0.40
codegen_flags: <defaults>
</compile_context>

<pallas_src>
import jax
import jax.numpy as jnp
from jax.experimental import pallas as pl
from jax.experimental.pallas import tpu as pltpu

CP = 128  # lane-padded class dimension (keeps head / softmax / CE lane-dense)


def _model_kernel(ids_ref, labels_ref, emb_ref, w_ref, b_ref, out_ref):
    """Single-step kernel (no grid): synthetic encoder + softmax + CE, batched.

    ids_ref    : (B, S, 1) int32  -- input_ids, pre-shaped in the wrapper so the
                                     vocab compare only broadcasts along lanes
    labels_ref : (B, 1)    int32
    emb_ref    : (V, H)    bf16   -- embedding table (one streaming DMA)
    w_ref      : (H, CP)   f32    -- zero-padded classifier weight
    b_ref      : (1, CP)   f32    -- bias, padded columns = -1e30
    out_ref    : (2, B, CP) f32   -- [0] = softmax probs
                                     [1] = aux (col0 nll, col1 valid, col2 loss)
    """
    B, S, _ = ids_ref.shape
    V, H = emb_ref.shape

    ids = ids_ref[...]                                   # (B, S, 1) int32
    mask = ids != 1                                      # attention_mask = ne(1)

    # ---- pooling as histogram @ embedding (single MXU matmul, no gather) ----
    vocab = jax.lax.broadcasted_iota(jnp.int32, (B, S, V), 2)
    onehot = jnp.where((ids == vocab) & mask, 1.0, 0.0)  # (B, S, V) f32
    counts = jnp.sum(onehot, axis=1)                     # (B, V), exact small ints
    pooled_sum = jnp.dot(counts.astype(jnp.bfloat16), emb_ref[...],
                         preferred_element_type=jnp.float32)           # (B, H)
    denom = jnp.sum(mask.astype(jnp.float32), axis=1)    # (B, 1)
    pooled = pooled_sum / jnp.maximum(denom, 1.0)        # masked mean pool

    # ---- batched classifier head + softmax ----------------------------------
    # padded columns have weight 0 and bias -1e30 -> exp underflows to 0
    logits = jnp.dot(pooled, w_ref[...],
                     preferred_element_type=jnp.float32) + b_ref[...]  # (B, CP)
    m = jnp.max(logits, axis=-1, keepdims=True)
    e = jnp.exp(logits - m)
    z = jnp.sum(e, axis=-1, keepdims=True)
    prob = e / z                                         # exact (relay takes log)

    # ---- per-example cross entropy with ignore_index = -1 -------------------
    lab = labels_ref[...]                                # (B, 1) int32
    col = jax.lax.broadcasted_iota(jnp.int32, (B, CP), 1)
    logp = (logits - m) - jnp.log(z)
    onehot_lab = (col == lab).astype(jnp.float32)
    valid = (lab != -1).astype(jnp.float32)              # (B, 1)
    nll = -jnp.sum(onehot_lab * logp, axis=-1, keepdims=True) * valid  # (B, 1)
    nll_sum = jnp.sum(nll, axis=0, keepdims=True)        # (1, 1)
    n_valid = jnp.sum(valid, axis=0, keepdims=True)      # (1, 1)
    loss = nll_sum / jnp.maximum(n_valid, 1.0)           # mean over valid rows

    aux = jnp.where(col == 0, nll,
                    jnp.where(col == 1, valid,
                              jnp.where(col == 2, loss, 0.0)))          # (B, CP)
    out_ref[0, :, :] = prob
    out_ref[1, :, :] = aux


def model_forward(input_ids, labels, emb_table, w, b, relay=None):
    """Mirrors Model.forward(input_ids, labels, relay)."""
    B, S = input_ids.shape
    V, H = emb_table.shape
    C = w.shape[1]
    assert C <= CP

    # pre-shape ids to (B, S, 1) so the in-kernel vocab compare is a pure
    # lane-broadcast (no in-kernel relayout), like flash-attention segment ids.
    ids3d = input_ids.astype(jnp.int32).reshape(B, S, 1)

    if labels is None:
        labels_arr = jnp.full((B,), -1, dtype=jnp.int32)   # dummy: all ignored
    else:
        labels_arr = jnp.asarray(labels).reshape(B).astype(jnp.int32)
    labels2d = labels_arr.reshape(B, 1)

    # lane-dense padded head: zero-pad W, pad bias with -1e30 so padded
    # columns contribute nothing to softmax / logsumexp.
    w_pad = jnp.zeros((H, CP), jnp.float32).at[:, :C].set(w.astype(jnp.float32))
    b_pad = jnp.full((1, CP), -1e30, jnp.float32).at[:, :C].set(
        b.reshape(1, C).astype(jnp.float32))

    # stream the embedding table once, in bf16 (feeds the MXU histogram matmul)
    emb_bf16 = emb_table.astype(jnp.bfloat16)

    vmem = pltpu.MemorySpace.VMEM
    out = pl.pallas_call(
        _model_kernel,
        out_shape=jax.ShapeDtypeStruct((2, B, CP), jnp.float32),
        in_specs=[pl.BlockSpec(memory_space=vmem)] * 5,
        out_specs=pl.BlockSpec(memory_space=vmem),
    )(ids3d, labels2d, emb_bf16, w_pad, b_pad)

    prob = out[0, :, :C]                                    # [B, C]

    if relay is True:
        # relay branch: mirrors the torch wrapper exactly (uses prob[:, 0])
        lab_f = labels_arr.astype(jnp.float32)
        relay_ll = (jnp.log(prob[:, 0] + 1e-10) * lab_f
                    + jnp.log(1.0 - prob[:, 0] + 1e-10) * (1.0 - lab_f))
        return -relay_ll, prob

    if labels is not None:
        return out[1, 0, 2], prob                           # mean CE loss, prob

    return prob


def _reference(input_ids, labels, emb_table, w, b):
    """Pure-JAX reference of the synthetic encoder + softmax + CE."""
    emb = jnp.take(emb_table.astype(jnp.bfloat16), input_ids,
                   axis=0).astype(jnp.float32)
    mask = (input_ids != 1).astype(jnp.float32)
    denom = jnp.maximum(mask.sum(-1, keepdims=True), 1.0)
    pooled = (emb * mask[:, :, None]).sum(1) / denom
    logits = pooled @ w.astype(jnp.float32) + b.astype(jnp.float32)
    m = logits.max(-1, keepdims=True)
    e = jnp.exp(logits - m)
    z = e.sum(-1, keepdims=True)
    prob = e / z
    logp = (logits - m) - jnp.log(z)
    valid = (labels != -1).astype(jnp.float32)
    onehot = jax.nn.one_hot(jnp.clip(labels, 0, w.shape[1] - 1), w.shape[1])
    nll = -(onehot * logp).sum(-1) * valid
    loss = nll.sum() / jnp.maximum(valid.sum(), 1.0)
    return loss, prob


if __name__ == "__main__":
    # Small deterministic setup: batch=4, seq=64, hidden=128, vocab=256, C=2
    B, S, H, V, C = 4, 64, 128, 256, 2
    key = jax.random.PRNGKey(0)
    k_ids, k_emb, k_w, k_b = jax.random.split(key, 4)

    input_ids = jax.random.randint(k_ids, (B, S), 2, V, dtype=jnp.int32)
    input_ids = input_ids.at[:, -8:].set(1)        # pad tokens (id == 1)
    labels = jnp.array([1, 0, 1, -1], dtype=jnp.int32)   # includes ignore_index

    emb_table = jax.random.normal(k_emb, (V, H), jnp.float32) * 0.02
    w = jax.random.normal(k_w, (H, C), jnp.float32) * 0.1
    b = jax.random.normal(k_b, (C,), jnp.float32) * 0.01

    # labels path: (loss, prob)
    loss, prob = model_forward(input_ids, labels, emb_table, w, b)
    jax.block_until_ready((loss, prob))

    # relay path: (-per_example_loss, prob)
    relay_loss, prob_r = model_forward(input_ids, labels, emb_table, w, b,
                                       relay=True)
    jax.block_until_ready((relay_loss, prob_r))

    # no-label path: prob only
    prob_nl = model_forward(input_ids, None, emb_table, w, b)
    jax.block_until_ready(prob_nl)

    # correctness check vs. pure-JAX reference
    loss_ref, prob_ref = _reference(input_ids, labels, emb_table, w, b)
    assert prob.shape == (B, C) and loss.shape == ()
    assert relay_loss.shape == (B,) and prob_nl.shape == (B, C)
    assert bool(jnp.allclose(prob, prob_ref, atol=2e-2, rtol=2e-2))
    assert bool(jnp.allclose(loss, loss_ref, atol=2e-2, rtol=2e-2))
    assert bool(jnp.allclose(prob_nl, prob_ref, atol=2e-2, rtol=2e-2))

    print("KERNEL_OK")
</pallas_src>

<mosaic_0001>
module attributes {stable_mosaic.version = 11 : i64} {
  func.func @_model_kernel(%arg0: memref<4x64x1xi32, #tpu.memory_space<vmem>>, %arg1: memref<4x1xi32, #tpu.memory_space<vmem>>, %arg2: memref<256x128xbf16, #tpu.memory_space<vmem>>, %arg3: memref<128x128xf32, #tpu.memory_space<vmem>>, %arg4: memref<1x128xf32, #tpu.memory_space<vmem>>, %arg5: memref<2x4x128xf32, #tpu.memory_space<vmem>>) attributes {dimension_semantics = [], scalar_prefetch = 0 : i64, scratch_operands = 0 : i64, tpu.core_type = #tpu.core_type<tc>} {
    %c0 = arith.constant 0 : index
    %c0_0 = arith.constant 0 : index
    %c0_1 = arith.constant 0 : index
    %0 = vector.load %arg0[%c0, %c0_0, %c0_1] : memref<4x64x1xi32, #tpu.memory_space<vmem>>, vector<4x64x1xi32>
    %c1_i32 = arith.constant 1 : i32
    %1 = vector.broadcast %c1_i32 : i32 to vector<4x64x1xi32>
    %2 = arith.cmpi ne, %0, %1 : vector<4x64x1xi32>
    %3 = tpu.iota {dimensions = array<i32: 2>} : vector<4x64x256xi32>
    %4 = vector.broadcast %0 : vector<4x64x1xi32> to vector<4x64x256xi32>
    %5 = arith.cmpi eq, %4, %3 : vector<4x64x256xi32>
    %6 = vector.broadcast %2 : vector<4x64x1xi1> to vector<4x64x256xi1>
    %7 = arith.andi %5, %6 : vector<4x64x256xi1>
    %cst = arith.constant 1.000000e+00 : f32
    %cst_2 = arith.constant 0.000000e+00 : f32
    %8 = vector.broadcast %cst : f32 to vector<4x64x256xf32>
    %9 = vector.broadcast %cst_2 : f32 to vector<4x64x256xf32>
    %10 = arith.select %7, %8, %9 : vector<4x64x256xi1>, vector<4x64x256xf32>
    %cst_3 = arith.constant dense<0.000000e+00> : vector<4x256xf32>
    %11 = vector.multi_reduction <add>, %10, %cst_3 [1] : vector<4x64x256xf32> to vector<4x256xf32>
    %12 = arith.truncf %11 : vector<4x256xf32> to vector<4x256xbf16>
    %c0_4 = arith.constant 0 : index
    %c0_5 = arith.constant 0 : index
    %13 = vector.load %arg2[%c0_4, %c0_5] : memref<256x128xbf16, #tpu.memory_space<vmem>>, vector<256x128xbf16>
    %cst_6 = arith.constant dense<0.000000e+00> : vector<4x128xf32>
    %14 = tpu.matmul %12, %13, %cst_6 {dimension_numbers = #tpu.dot_dimension_numbers<[1], [0], [0], [1], [0, 0, 1, 1], [], []>} : vector<4x256xbf16>, vector<256x128xbf16>, vector<4x128xf32> -> vector<4x128xf32>
    %15 = arith.extui %2 : vector<4x64x1xi1> to vector<4x64x1xi32>
    %16 = arith.sitofp %15 : vector<4x64x1xi32> to vector<4x64x1xf32>
    %cst_7 = arith.constant dense<0.000000e+00> : vector<4x1xf32>
    %17 = vector.multi_reduction <add>, %16, %cst_7 [1] : vector<4x64x1xf32> to vector<4x1xf32>
    %cst_8 = arith.constant 1.000000e+00 : f32
    %18 = vector.broadcast %cst_8 : f32 to vector<4x1xf32>
    %19 = arith.maximumf %17, %18 : vector<4x1xf32>
    %20 = vector.broadcast %19 : vector<4x1xf32> to vector<4x128xf32>
    %21 = arith.divf %14, %20 : vector<4x128xf32>
    %c0_9 = arith.constant 0 : index
    %c0_10 = arith.constant 0 : index
    %22 = vector.load %arg3[%c0_9, %c0_10] : memref<128x128xf32, #tpu.memory_space<vmem>>, vector<128x128xf32>
    %cst_11 = arith.constant dense<0.000000e+00> : vector<4x128xf32>
    %23 = tpu.matmul %21, %22, %cst_11 {dimension_numbers = #tpu.dot_dimension_numbers<[1], [0], [0], [1], [0, 0, 1, 1], [], []>} : vector<4x128xf32>, vector<128x128xf32>, vector<4x128xf32> -> vector<4x128xf32>
    %c0_12 = arith.constant 0 : index
    %c0_13 = arith.constant 0 : index
    %24 = vector.load %arg4[%c0_12, %c0_13] : memref<1x128xf32, #tpu.memory_space<vmem>>, vector<1x128xf32>
    %25 = vector.broadcast %24 : vector<1x128xf32> to vector<4x128xf32>
    %26 = arith.addf %23, %25 : vector<4x128xf32>
    %cst_14 = arith.constant dense<0xFF800000> : vector<4xf32>
    %27 = vector.multi_reduction <maximumf>, %26, %cst_14 [1] : vector<4x128xf32> to vector<4xf32>
    %28 = vector.shape_cast %27 : vector<4xf32> to vector<4x1xf32>
    %29 = vector.broadcast %28 : vector<4x1xf32> to vector<4x128xf32>
    %30 = arith.subf %26, %29 : vector<4x128xf32>
    %31 = math.exp %30 : vector<4x128xf32>
    %cst_15 = arith.constant dense<0.000000e+00> : vector<4xf32>
    %32 = vector.multi_reduction <add>, %31, %cst_15 [1] : vector<4x128xf32> to vector<4xf32>
    %33 = vector.shape_cast %32 : vector<4xf32> to vector<4x1xf32>
    %34 = vector.broadcast %33 : vector<4x1xf32> to vector<4x128xf32>
    %35 = arith.divf %31, %34 : vector<4x128xf32>
    %c0_16 = arith.constant 0 : index
    %c0_17 = arith.constant 0 : index
    %36 = vector.load %arg1[%c0_16, %c0_17] : memref<4x1xi32, #tpu.memory_space<vmem>>, vector<4x1xi32>
    %37 = tpu.iota {dimensions = array<i32: 1>} : vector<4x128xi32>
    %38 = vector.broadcast %28 : vector<4x1xf32> to vector<4x128xf32>
    %39 = arith.subf %26, %38 : vector<4x128xf32>
    %40 = math.log %33 : vector<4x1xf32>
    %41 = vector.broadcast %40 : vector<4x1xf32> to vector<4x128xf32>
    %42 = arith.subf %39, %41 : vector<4x128xf32>
    %43 = vector.broadcast %36 : vector<4x1xi32> to vector<4x128xi32>
    %44 = arith.cmpi eq, %37, %43 : vector<4x128xi32>
    %45 = arith.extui %44 : vector<4x128xi1> to vector<4x128xi32>
    %46 = arith.sitofp %45 : vector<4x128xi32> to vector<4x128xf32>
    %c-1_i32 = arith.constant -1 : i32
    %47 = vector.broadcast %c-1_i32 : i32 to vector<4x1xi32>
    %48 = arith.cmpi ne, %36, %47 : vector<4x1xi32>
    %49 = arith.extui %48 : vector<4x1xi1> to vector<4x1xi32>
    %50 = arith.sitofp %49 : vector<4x1xi32> to vector<4x1xf32>
    %51 = arith.mulf %46, %42 : vector<4x128xf32>
    %cst_18 = arith.constant dense<0.000000e+00> : vector<4xf32>
    %52 = vector.multi_reduction <add>, %51, %cst_18 [1] : vector<4x128xf32> to vector<4xf32>
    %53 = vector.shape_cast %52 : vector<4xf32> to vector<4x1xf32>
    %cst_19 = arith.constant 0.000000e+00 : f32
    %54 = vector.broadcast %cst_19 : f32 to vector<4x1xf32>
    %55 = arith.subf %54, %53 : vector<4x1xf32>
    %56 = arith.mulf %55, %50 : vector<4x1xf32>
    %cst_20 = arith.constant dense<0.000000e+00> : vector<1xf32>
    %57 = vector.multi_reduction <add>, %56, %cst_20 [0] : vector<4x1xf32> to vector<1xf32>
    %58 = vector.shape_cast %57 : vector<1xf32> to vector<1x1xf32>
    %cst_21 = arith.constant dense<0.000000e+00> : vector<1xf32>
    %59 = vector.multi_reduction <add>, %50, %cst_21 [0] : vector<4x1xf32> to vector<1xf32>
    %60 = vector.shape_cast %59 : vector<1xf32> to vector<1x1xf32>
    %cst_22 = arith.constant 1.000000e+00 : f32
    %61 = vector.broadcast %cst_22 : f32 to vector<1x1xf32>
    %62 = arith.maximumf %60, %61 : vector<1x1xf32>
    %63 = arith.divf %58, %62 : vector<1x1xf32>
    %c0_i32 = arith.constant 0 : i32
    %64 = vector.broadcast %c0_i32 : i32 to vector<4x128xi32>
    %65 = arith.cmpi eq, %37, %64 : vector<4x128xi32>
    %c1_i32_23 = arith.constant 1 : i32
    %66 = vector.broadcast %c1_i32_23 : i32 to vector<4x128xi32>
    %67 = arith.cmpi eq, %37, %66 : vector<4x128xi32>
    %c2_i32 = arith.constant 2 : i32
    %68 = vector.broadcast %c2_i32 : i32 to vector<4x128xi32>
    %69 = arith.cmpi eq, %37, %68 : vector<4x128xi32>
    %cst_24 = arith.constant 0.000000e+00 : f32
    %70 = vector.shape_cast %63 : vector<1x1xf32> to vector<1x1xf32>
    %71 = vector.broadcast %70 : vector<1x1xf32> to vector<4x128xf32>
    %72 = vector.broadcast %cst_24 : f32 to vector<4x128xf32>
    %73 = arith.select %69, %71, %72 : vector<4x128xi1>, vector<4x128xf32>
    %74 = vector.shape_cast %50 : vector<4x1xf32> to vector<4x1xf32>
    %75 = vector.broadcast %74 : vector<4x1xf32> to vector<4x128xf32>
    %76 = arith.select %67, %75, %73 : vector<4x128xi1>, vector<4x128xf32>
    %77 = vector.shape_cast %56 : vector<4x1xf32> to vector<4x1xf32>
    %78 = vector.broadcast %77 : vector<4x1xf32> to vector<4x128xf32>
    %79 = arith.select %65, %78, %76 : vector<4x128xi1>, vector<4x128xf32>
    %c0_25 = arith.constant 0 : index
    %c0_26 = arith.constant 0 : index
    %c0_27 = arith.constant 0 : index
    %80 = vector.load %arg5[%c0_25, %c0_26, %c0_27] : memref<2x4x128xf32, #tpu.memory_space<vmem>>, vector<1x4x128xf32>
    %81 = vector.shape_cast %80 : vector<1x4x128xf32> to vector<4x128xf32>
    %82 = vector.shape_cast %35 : vector<4x128xf32> to vector<1x4x128xf32>
    tpu.vector_store %arg5[%c0_25, %c0_26, %c0_27], %82 {strides = array<i32>} : memref<2x4x128xf32, #tpu.memory_space<vmem>>, vector<1x4x128xf32>,
    %c1 = arith.constant 1 : index
    %c0_28 = arith.constant 0 : index
    %c0_29 = arith.constant 0 : index
    %83 = vector.load %arg5[%c1, %c0_28, %c0_29] : memref<2x4x128xf32, #tpu.memory_space<vmem>>, vector<1x4x128xf32>
    %84 = vector.shape_cast %83 : vector<1x4x128xf32> to vector<4x128xf32>
    %85 = vector.shape_cast %79 : vector<4x128xf32> to vector<1x4x128xf32>
    tpu.vector_store %arg5[%c1, %c0_28, %c0_29], %85 {strides = array<i32>} : memref<2x4x128xf32, #tpu.memory_space<vmem>>, vector<1x4x128xf32>,
    return
  }
}

</mosaic_0001>

<bundles_post_ra>
// kernel: tpu_custom_call.1
= control target key start
LH: loop header
LB: loop body
LE: loop exit
PB: predicated region body
PF: predicated region fallthrough
CT: control target
= control target key end

     0   :  { %vm863_vm0 = vcmask 7168   ;;  %v1303_v2 = vmov 0   ;;  %v1304_v4 = vmov 0.0   ;;  %s2201_s0 = inlined_call_operand.vmem [shape: s32[4,64,1], index: 0, kind: input, shape index: {}]   ;;  %s2202_s1 = inlined_call_operand.vmem [shape: s32[4,1], index: 1, kind: input, shape index: {}]   ;;  %s2203_s2 = inlined_call_operand.vmem [shape: bf16[256,128], index: 2, kind: input, shape index: {}]   ;;  %s2204_s3 = inlined_call_operand.vmem [shape: f32[128,128], index: 3, kind: input, shape index: {}]   ;;  %s2205_s4 = inlined_call_operand.vmem [shape: f32[1,128], index: 4, kind: input, shape index: {}]   ;;  %s2206_s5 = inlined_call_operand.hbm [shape: f32[2,4,128], index: 5, kind: output, shape index: {}]  }
   0x1   :  { %v29_v0 = vld [vmem:[%s2201_s0 + $0x40] sm:$0xff]  ;;  %1264 = vset.pattern.permute.xlu1 %v1303_v2  ;;  %1263 = vset.pattern.permute.xlu0 %v1303_v2  ;;  %v22_v3 = vld [vmem:[%s2201_s0 + $0x8] sm:$0xff] }
   0x2   :  { %v21_v1 = vld [vmem:[%s2201_s0] sm:$0xff]  ;;  %vm61_vm1 = vcmp.ne.s32.totalorder %v29_v0, 1  ;;  %1265 = vset.pattern.permute.xlu2 %v1303_v2  ;;  %113 = vperm.xlu1 %1264, %v29_v0   ;;  %v30_v8 = vld [vmem:[%s2201_s0 + $0x48] sm:$0xff]  ;;  %vm54_vm3 = vcmp.ne.s32.totalorder %v22_v3, 1 }
   0x3   :  { %vm53_vm2 = vcmp.ne.s32.totalorder %v21_v1, 1  ;;  %v1216_v5 = vsel %vm61_vm1, 1.0, %v1304_v4  ;;  %89 = vperm.xlu0 %1263, %v21_v1   ;;  %v1209_v11 = vsel %vm54_vm3, 1.0, %v1304_v4  ;;  %vm62_vm4 = vcmp.ne.s32.totalorder %v30_v8, 1  ;;  %v38_v12 = vld [vmem:[%s2201_s0 + $0x88] sm:$0xff]  ;;  %v37_v15 = vld [vmem:[%s2201_s0 + $0x80] sm:$0xff] }
   0x4   :  { %v248_v6 = vsel %vm53_vm2, 1, %v1303_v2  ;;  %v1208_v7 = vsel %vm53_vm2, 1.0, %v1304_v4  ;;  %v885_v9 = vsel %vm863_vm0, %v1216_v5, 0.0  ;;  %v865_v13 = vsel %vm863_vm0, %v1209_v11, 0.0 }
   0x5   :  { %v864_v10 = vsel %vm863_vm0, %v1208_v7, 0.0  ;;  %281 = vperm.xlu2 %1265, %v248_v6   ;;  %v1217_v14 = vsel %vm62_vm4, 1.0, %v1304_v4  ;;  %vm69_vm5 = vcmp.ne.s32.totalorder %v37_v15, 1 }
   0x6   :  { %v866_v16 = vadd.f32 %v865_v13, %v864_v10  ;;  %v886_v17 = vsel %vm863_vm0, %v1217_v14, 0.0 }
   0x7   :  { %10 = vsyncpa [#allocation3], 0  ;;  %v887_v18 = vadd.f32 %v886_v17, %v885_v9  ;;  %v1224_v19 = vsel %vm69_vm5, 1.0, %v1304_v4  ;;  %vm70_vm6 = vcmp.ne.s32.totalorder %v38_v12, 1  ;;  %v23_v20 = vld [vmem:[%s2201_s0 + $0x10] sm:$0xff]  ;;  %v249_v23 = vsel %vm54_vm3, 1, %v1303_v2 }
   0x8   :  { %v906_v21 = vsel %vm863_vm0, %v1224_v19, 0.0  ;;  %v1225_v22 = vsel %vm70_vm6, 1.0, %v1304_v4  ;;  %vm55_vm7 = vcmp.ne.s32.totalorder %v23_v20, 1  ;;  %v31_v27 = vld [vmem:[%s2201_s0 + $0x50] sm:$0xff]  ;;  %v46_v31 = vld [vmem:[%s2201_s0 + $0xc8] sm:$0xff]  ;;  %v257_v35 = vsel %vm62_vm4, 1, %v1303_v2 }
   0x9   :  { %v907_v24 = vsel %vm863_vm0, %v1225_v22, 0.0  ;;  %v1210_v25 = vsel %vm55_vm7, 1.0, %v1304_v4  ;;  %vm63_vm8 = vcmp.ne.s32.totalorder %v31_v27, 1  ;;  %vm78_vm9 = vcmp.ne.s32.totalorder %v46_v31, 1  ;;  %v45_v37 = vld [vmem:[%s2201_s0 + $0xc0] sm:$0xff]  ;;  %v39_v44 = vld [vmem:[%s2201_s0 + $0x90] sm:$0xff] }
   0xa   :  { %v908_v26 = vadd.f32 %v907_v24, %v906_v21  ;;  %v867_v28 = vsel %vm863_vm0, %v1210_v25, 0.0  ;;  %116 = vperm.xlu1 %1264, %v30_v8   ;;  %v1218_v30 = vsel %vm63_vm8, 1.0, %v1304_v4  ;;  %v1233_v34 = vsel %vm78_vm9, 1.0, %v1304_v4  ;;  %v24_v45 = vld [vmem:[%s2201_s0 + $0x18] sm:$0xff]  ;;  %v47_v59 = vld [vmem:[%s2201_s0 + $0xd0] sm:$0xff]  ;;  %v33_v11 = vld [vmem:[%s2201_s0 + $0x60] sm:$0xff] }
   0xb   :  { %v868_v29 = vadd.f32 %v867_v28, %v866_v16  ;;  %92 = vperm.xlu0 %1263, %v22_v3   ;;  %v888_v32 = vsel %vm863_vm0, %v1218_v30, 0.0  ;;  %v256_v36 = vsel %vm61_vm1, 1, %v1303_v2  ;;  %v928_v38 = vsel %vm863_vm0, %v1233_v34, 0.0  ;;  %v32_v51 = vld [vmem:[%s2201_s0 + $0x58] sm:$0xff]  ;;  %v41_v17 = vld [vmem:[%s2201_s0 + $0xa0] sm:$0xff]  ;;  %v42_v30 = vld [vmem:[%s2201_s0 + $0xa8] sm:$0xff] }
   0xc   :  { %v889_v33 = vadd.f32 %v888_v32, %v887_v18  ;;  %vm77_vm10 = vcmp.ne.s32.totalorder %v45_v37, 1  ;;  %v264_v42 = vsel %vm69_vm5, 1, %v1303_v2  ;;  %v265_v43 = vsel %vm70_vm6, 1, %v1303_v2  ;;  %v40_v57 = vld [vmem:[%s2201_s0 + $0x98] sm:$0xff]  ;;  %v49_v22 = vld [vmem:[%s2201_s0 + $0xe0] sm:$0xff]  ;;  %s1132_s19 = sshll.u32 %s2206_s5, 4  ;;  %s1133_s19 = int_to_ptr.hbm [resolvable:$true] %s1132_s19 }
   0xd   :  { %284 = vperm.xlu2 %1265, %v249_v23   ;;  %v1232_v39 = vsel %vm77_vm10, 1.0, %v1304_v4  ;;  %vm71_vm11 = vcmp.ne.s32.totalorder %v39_v44, 1  ;;  %vm56_vm12 = vcmp.ne.s32.totalorder %v24_v45, 1  ;;  %vm64_vm13 = vcmp.ne.s32.totalorder %v32_v51, 1  ;;  %v48_v13 = vld [vmem:[%s2201_s0 + $0xd8] sm:$0xff]  ;;  %v34_v23 = vld [vmem:[%s2201_s0 + $0x68] sm:$0xff] }
   0xe   :  { %v927_v40 = vsel %vm863_vm0, %v1232_v39, 0.0  ;;  %v1226_v46 = vsel %vm71_vm11, 1.0, %v1304_v4  ;;  %v1211_v49 = vsel %vm56_vm12, 1.0, %v1304_v4  ;;  %v1219_v53 = vsel %vm64_vm13, 1.0, %v1304_v4  ;;  %s1306_s20 = smov 64   ;;  %s1307_s21 = smov 4  }
   0xf   :  { %v929_v41 = vadd.f32 %v928_v38, %v927_v40  ;;  %v909_v47 = vsel %vm863_vm0, %v1226_v46, 0.0  ;;  %v869_v50 = vsel %vm863_vm0, %v1211_v49, 0.0  ;;  %v890_v54 = vsel %vm863_vm0, %v1219_v53, 0.0 }
  0x10   :  { %v910_v48 = vadd.f32 %v909_v47, %v908_v26  ;;  %v1426_v52 = vadd.f32 %v869_v50, %v868_v29  ;;  %v1431_v55 = vadd.f32 %v890_v54, %v889_v33  ;;  %v250_v56 = vsel %vm55_vm7, 1, %v1303_v2  ;;  %v35_v47 = vld [vmem:[%s2201_s0 + $0x70] sm:$0xff] }
  0x11   :  { %v258_v58 = vsel %vm63_vm8, 1, %v1303_v2  ;;  %vm79_vm14 = vcmp.ne.s32.totalorder %v47_v59, 1  ;;  %vm72_vm15 = vcmp.ne.s32.totalorder %v40_v57, 1  ;;  %v273_v3 = vsel %vm78_vm9, 1, %v1303_v2 }
  0x12   :  { %308 = vperm.xlu1 %1264, %v257_v35   ;;  %v1234_v60 = vsel %vm79_vm14, 1.0, %v1304_v4  ;;  %v1227_v62 = vsel %vm72_vm15, 1.0, %v1304_v4  ;;  %v272_v5 = vsel %vm77_vm10, 1, %v1303_v2  ;;  %v266_v6 = vsel %vm71_vm11, 1, %v1303_v2 }
  0x13   :  { %305 = vperm.xlu0 %1263, %v256_v36   ;;  %v930_v61 = vsel %vm863_vm0, %v1234_v60, 0.0  ;;  %v911_v0 = vsel %vm863_vm0, %v1227_v62, 0.0  ;;  %v251_v7 = vsel %vm56_vm12, 1, %v1303_v2  ;;  %v259_v8 = vsel %vm64_vm13, 1, %v1303_v2 }
  0x14   :  { %v1448_v63 = vadd.f32 %v930_v61, %v929_v41  ;;  %v1451_v1 = vadd.f32 %v911_v0, %v910_v48  ;;  %v274_v9 = vsel %vm79_vm14, 1, %v1303_v2  ;;  %v267_v10 = vsel %vm72_vm15, 1, %v1303_v2 }
  0x15   :  { %137 = vperm.xlu2 %1265, %v37_v15   ;;  %vm65_vm1 = vcmp.ne.s32.totalorder %v33_v11, 1  ;;  %vm80_vm3 = vcmp.ne.s32.totalorder %v48_v13, 1  ;;  %vm73_vm4 = vcmp.ne.s32.totalorder %v41_v17, 1  ;;  %v85_v25 = vlaneseq }
  0x16   :  { %v260_v14 = vsel %vm65_vm1, 1, %v1303_v2  ;;  %v275_v16 = vsel %vm80_vm3, 1, %v1303_v2  ;;  %v268_v19 = vsel %vm73_vm4, 1, %v1303_v2  ;;  %vm81_vm6 = vcmp.ne.s32.totalorder %v49_v22, 1 }
  0x17   :  { %vm66_vm7 = vcmp.ne.s32.totalorder %v34_v23, 1  ;;  %v276_v28 = vsel %vm81_vm6, 1, %v1303_v2  ;;  %v1220_v33 = vsel %vm65_vm1, 1.0, %v1304_v4  ;;  %vm74_vm9 = vcmp.ne.s32.totalorder %v42_v30, 1 }
  0x18   :  { %v261_v29 = vsel %vm66_vm7, 1, %v1303_v2  ;;  %v892_v38 = vsel %vm863_vm0, %v1220_v33, 0.0  ;;  %v1235_v39 = vsel %vm80_vm3, 1.0, %v1304_v4  ;;  %v1228_v40 = vsel %vm73_vm4, 1.0, %v1304_v4 }
  0x19   :  { %v269_v46 = vsel %vm74_vm9, 1, %v1303_v2  ;;  %v893_v49 = vadd.f32 %v892_v38, %v1431_v55  ;;  %v932_v50 = vsel %vm863_vm0, %v1235_v39, 0.0  ;;  %v1236_v54 = vsel %vm81_vm6, 1.0, %v1304_v4  ;;  %v1637_v38 = vld [vmem:[%s2201_s0 + $0xf0] sm:$0xff]  ;;  %v1642_v39 = vld [vmem:[%s2201_s0 + $0xf8] sm:$0xff] }
  0x1a   :  { %329 = vperm.xlu1 %1264, %v264_v42   ;;  %vm67_vm1 = vcmp.ne.s32.totalorder %v35_v47, 1  ;;  %v1652_v42 = vld [vmem:[%s2201_s0 + $0xb8] sm:$0xff] }
  0x1b   :  { %140 = vperm.xlu0 %1263, %v38_v12   ;;  %v25_v12 = vld [vmem:[%s2201_s0 + $0x20] sm:$0xff]  ;;  %v1222_v0 = vsel %vm67_vm1, 1.0, %v1304_v4 }
  0x1c   :  { %vm57_vm2 = vcmp.ne.s32.totalorder %v25_v12, 1 }
  0x1d   :  { %332 = vperm.xlu2 %1265, %v265_v43   ;;  %v252_v15 = vsel %vm57_vm2, 1, %v1303_v2  ;;  %v1212_v32 = vsel %vm57_vm2, 1.0, %v1304_v4  ;;  %v27_v43 = vld [vmem:[%s2201_s0 + $0x30] sm:$0xff] }
  0x1e   :  { %vm59_vm14 = vcmp.ne.s32.totalorder %v27_v43, 1 }
  0x22   :  { %119 = vperm.xlu1 %1264, %v31_v27   ;;  %v1502_v27 = vand.u32 127, %v85_v25 }
  0x23   :  { %95 = vperm.xlu0 %1263, %v23_v20   ;;  %v26_v20 = vld [vmem:[%s2201_s0 + $0x28] sm:$0xff] }
  0x24   :  { %vm58_vm5 = vcmp.ne.s32.totalorder %v26_v20, 1 }
  0x25   :  { %161 = vperm.xlu2 %1265, %v45_v37   ;;  %v253_v24 = vsel %vm58_vm5, 1, %v1303_v2  ;;  %v871_v37 = vsel %vm863_vm0, %v1212_v32, 0.0  ;;  %v1213_v41 = vsel %vm58_vm5, 1.0, %v1304_v4 }
  0x26   :  { %v872_v48 = vadd.f32 %v871_v37, %v1426_v52  ;;  %v873_v53 = vsel %vm863_vm0, %v1213_v41, 0.0  ;;  %v1229_v52 = vsel %vm74_vm9, 1.0, %v1304_v4 }
  0x28   :  { %v874_v60 = vadd.f32 %v873_v53, %v872_v48 }
  0x2a   :  { %287 = vperm.xlu1 %1264, %v250_v56  }
  0x2b   :  { %164 = vperm.xlu0 %1263, %v46_v31   ;;  %v1512_v31 = vadd.s32 128, %v1502_v27 }
  0x2d   :  { %311 = vperm.xlu2 %1265, %v258_v58   ;;  %v933_v58 = vadd.f32 %v932_v50, %v1448_v63  ;;  %v254_v63 = vsel %vm59_vm14, 1, %v1303_v2 }
  0x32   :  { %356 = vperm.xlu1 %1264, %v273_v3   ;;  %v934_v3 = vsel %vm863_vm0, %v1236_v54, 0.0 }
  0x33   :  { %353 = vperm.xlu0 %1263, %v272_v5  }
  0x35   :  { %143 = vperm.xlu2 %1265, %v39_v44   ;;  %v1221_v44 = vsel %vm66_vm7, 1.0, %v1304_v4 }
  0x36   :  { %v894_v56 = vsel %vm863_vm0, %v1221_v44, 0.0 }
  0x37   :  { %v895_v5 = vadd.f32 %v894_v56, %v893_v49 }
  0x3a   :  { %98 = vperm.xlu1 %1264, %v24_v45  }
  0x3b   :  { %335 = vperm.xlu0 %1263, %v266_v6   ;;  %v915_v6 = vsel %vm863_vm0, %v1229_v52, 0.0 }
  0x3d   :  { %122 = vperm.xlu2 %1265, %v32_v51   ;;  %v913_v51 = vsel %vm863_vm0, %v1228_v40, 0.0 }
  0x42   :  { %290 = vperm.xlu1 %1264, %v251_v7   ;;  %v50_v7 = vld [vmem:[%s2201_s0 + $0xe8] sm:$0xff] }
  0x43   :  { %167 = vperm.xlu0 %1263, %v47_v59   ;;  %v914_v59 = vadd.f32 %v913_v51, %v1451_v1  ;;  %vm82_vm6 = vcmp.ne.s32.totalorder %v50_v7, 1 }
  0x44   :  { %v277_v25 = vsel %vm82_vm6, 1, %v1303_v2 }
  0x45   :  { %314 = vperm.xlu2 %1265, %v259_v8   ;;  %v262_v8 = vsel %vm67_vm1, 1, %v1303_v2 }
  0x4a   :  { %146 = vperm.xlu1 %1264, %v40_v57   ;;  %v1214_v57 = vsel %vm59_vm14, 1.0, %v1304_v4 }
  0x4b   :  { %359 = vperm.xlu0 %1263, %v274_v9   ;;  %v875_v1 = vsel %vm863_vm0, %v1214_v57, 0.0 }
  0x4d   :  { %338 = vperm.xlu2 %1265, %v267_v10  }
  0x52   :  { %125 = vperm.xlu1 %1264, %v33_v11   ;;  %v896_v11 = vsel %vm863_vm0, %v1222_v0, 0.0 }
  0x53   :  { %101 = vperm.xlu0 %1263, %v25_v12   ;;  %v43_v12 = vld [vmem:[%s2201_s0 + $0xb0] sm:$0xff] }
  0x54   :  { %vm75_vm9 = vcmp.ne.s32.totalorder %v43_v12, 1 }
  0x55   :  { %170 = vperm.xlu2 %1265, %v48_v13   ;;  %v1598_v13 = vld [vmem:[%s2201_s0 + $0x38] sm:$0xff]  ;;  %v1230_v37 = vsel %vm75_vm9, 1.0, %v1304_v4 }
  0x56   :  { %vm60_vm7 = vcmp.ne.s32.totalorder %v1598_v13, 1  ;;  %v917_v48 = vsel %vm863_vm0, %v1230_v37, 0.0 }
  0x5a   :  { %317 = vperm.xlu1 %1264, %v260_v14  }
  0x5b   :  { %293 = vperm.xlu0 %1263, %v252_v15  }
  0x5d   :  { %362 = vperm.xlu2 %1265, %v275_v16  }
  0x5f   :  { %v282_v18 = vpop.permute.xlu2 %281 }
  0x60   :  { %vm376_vm8 = vcmp.eq.s32.totalorder %v282_v18, 1 }
  0x62   :  { %341 = vperm.xlu1 %1264, %v268_v19   ;;  %v1237_v19 = vsel %vm82_vm6, 1.0, %v1304_v4  ;;  %vm84_vm6 = vcmp.ne.s32.totalorder %v1642_v39, 1 }
  0x63   :  { %149 = vperm.xlu0 %1263, %v41_v17   ;;  %v1609_v17 = vld [vmem:[%s2201_s0 + $0x78] sm:$0xff]  ;;  %v936_v32 = vsel %vm863_vm0, %v1237_v19, 0.0  ;;  %v1239_v52 = vsel %vm84_vm6, 1.0, %v1304_v4 }
  0x65   :  { %104 = vperm.xlu2 %1265, %v26_v20   ;;  %v935_v20 = vadd.f32 %v934_v3, %v933_v58  ;;  %v940_v3 = vsel %vm863_vm0, %v1239_v52, 0.0 }
  0x67   :  { %v1490_v21 = vpop.permute.xlu2 %284 }
  0x68   :  { %vm377_vm15 = vcmp.eq.s32.totalorder %v1490_v21, 1  ;;  %v916_v21 = vadd.f32 %v915_v6, %v914_v59 }
  0x6a   :  { %173 = vperm.xlu1 %1264, %v49_v22   ;;  %v876_v22 = vadd.f32 %v875_v1, %v874_v60 }
  0x6b   :  { %128 = vperm.xlu0 %1263, %v34_v23   ;;  %v897_v23 = vadd.f32 %v896_v11, %v895_v5 }
  0x6d   :  { %296 = vperm.xlu2 %1265, %v253_v24  }
  0x6f   :  { %v1500_v26 = vpop.permute.xlu2 %137 }
  0x72   :  { %365 = vperm.xlu1 %1264, %v276_v28   ;;  %v1215_v28 = vsel %vm60_vm7, 1.0, %v1304_v4 }
  0x73   :  { %320 = vperm.xlu0 %1263, %v261_v29   ;;  %v877_v41 = vsel %vm863_vm0, %v1215_v28, 0.0 }
  0x74   :  { %v1518_v34 = vpop.permute.xlu1 %113  ;;  %v878_v50 = vadd.f32 %v877_v41, %v876_v22 }
  0x75   :  { %152 = vperm.xlu2 %1265, %v42_v30   ;;  %v90_v35 = vpop.permute.xlu0 %89 }
  0x76   :  { %vm184_vm10 = vcmp.eq.s32.totalorder %v90_v35, %v1502_v27  ;;  %vm185_vm11 = vcmp.eq.s32.totalorder %v90_v35, %v1512_v31  ;;  %v270_v35 = vsel %vm75_vm9, 1, %v1303_v2  ;;  %vm76_vm9 = vcmp.ne.s32.totalorder %v1652_v42, 1 }
  0x77   :  { %v1520_v36 = vpop.permute.xlu2 %332  ;;  %vm1533_vm12 = vmand %vm184_vm10, %vm376_vm8  ;;  %v1231_v59 = vsel %vm76_vm9, 1.0, %v1304_v4  ;;  %v879_v60 = vrot.slane %v878_v50, 4 }
  0x78   :  { %vm1543_vm13 = vmand %vm185_vm11, %vm376_vm8  ;;  %v472_v9 = vsel %vm1533_vm12, 1.0, %v1304_v4  ;;  %vm68_vm8 = vcmp.ne.s32.totalorder %v1609_v17, 1  ;;  %v919_v6 = vsel %vm863_vm0, %v1231_v59, 0.0 }
  0x79   :  { %v473_v14 = vsel %vm1543_vm13, 1.0, %v1304_v4  ;;  %v1223_v33 = vsel %vm68_vm8, 1.0, %v1304_v4  ;;  %v263_v22 = vsel %vm68_vm8, 1, %v1303_v2 }
  0x7a   :  { %107 = vperm.xlu1 %1264, %v27_v43   ;;  %v898_v44 = vsel %vm863_vm0, %v1223_v33, 0.0 }
  0x7b   :  { %344 = vperm.xlu0 %1263, %v269_v46   ;;  %v899_v53 = vadd.f32 %v898_v44, %v897_v23 }
  0x7c   :  { %v117_v55 = vpop.permute.xlu1 %116 }
  0x7d   :  { %131 = vperm.xlu2 %1265, %v35_v47   ;;  %v93_v61 = vpop.permute.xlu0 %92  ;;  %vm202_vm10 = vcmp.eq.s32.totalorder %v117_v55, %v1502_v27  ;;  %vm203_vm12 = vcmp.eq.s32.totalorder %v117_v55, %v1512_v31  ;;  %v937_v47 = vadd.f32 %v936_v32, %v935_v20  ;;  %v918_v55 = vadd.f32 %v917_v48, %v916_v21 }
  0x7e   :  { %vm186_vm2 = vcmp.eq.s32.totalorder %v93_v61, %v1502_v27  ;;  %vm187_vm3 = vcmp.eq.s32.totalorder %v93_v61, %v1512_v31  ;;  %v900_v0 = vrot.slane %v899_v53, 4 }
  0x7f   :  { %v1567_v62 = vpop.permute.xlu2 %161  ;;  %vm410_vm4 = vmand %vm186_vm2, %vm377_vm15  ;;  %vm83_vm2 = vcmp.ne.s32.totalorder %v1637_v38, 1  ;;  %v920_v11 = vadd.f32 %v919_v6, %v918_v55 }
  0x80   :  { %vm411_vm5 = vmand %vm187_vm3, %vm377_vm15  ;;  %v474_v10 = vsel %vm410_vm4, 1.0, %v1304_v4  ;;  %vm200_vm15 = vcmp.eq.s32.totalorder %v1518_v34, %v1502_v27  ;;  %vm201_vm3 = vcmp.eq.s32.totalorder %v1518_v34, %v1512_v31  ;;  %v1238_v45 = vsel %vm83_vm2, 1.0, %v1304_v4 }
  0x81   :  { %v475_v15 = vsel %vm411_vm5, 1.0, %v1304_v4  ;;  %v1604_v16 = vadd.f32 %v474_v10, %v472_v9  ;;  %v938_v54 = vsel %vm863_vm0, %v1238_v45, 0.0  ;;  %v901_v10 = vadd.f32 %v900_v0, %v899_v53 }
  0x82   :  { %v1612_v18 = vadd.f32 %v475_v15, %v473_v14  ;;  %299 = vperm.xlu1 %1264, %v254_v63   ;;  %v939_v61 = vadd.f32 %v938_v54, %v937_v47  ;;  %v921_v23 = vrot.slane %v920_v11, 4 }
  0x83   :  { %176 = vperm.xlu0 %1263, %v50_v7  }
  0x84   :  { %v309_v24 = vpop.permute.xlu1 %308 }
  0x85   :  { %323 = vperm.xlu2 %1265, %v262_v8   ;;  %vm385_vm11 = vcmp.eq.s32.totalorder %v309_v24, 1  ;;  %v306_v29 = vpop.permute.xlu0 %305  ;;  %v941_v8 = vadd.f32 %v940_v3, %v939_v61  ;;  %v902_v24 = vrot.slane %v901_v10, 2 }
  0x86   :  { %vm426_vm13 = vmand %vm202_vm10, %vm385_vm11  ;;  %vm384_vm14 = vcmp.eq.s32.totalorder %v306_v29, 1  ;;  %vm216_vm10 = vcmp.eq.s32.totalorder %v1500_v26, %v1502_v27  ;;  %v255_v29 = vsel %vm60_vm7, 1, %v1303_v2 }
  0x87   :  { %v1623_v30 = vpop.permute.xlu2 %311  ;;  %vm427_vm1 = vmand %vm203_vm12, %vm385_vm11  ;;  %v490_v40 = vsel %vm426_vm13, 1.0, %v1304_v4  ;;  %vm217_vm11 = vcmp.eq.s32.totalorder %v1500_v26, %v1512_v31  ;;  %v942_v19 = vrot.slane %v941_v8, 4  ;;  %v903_v37 = vadd.f32 %v902_v24, %v901_v10 }
  0x88   :  { %v491_v43 = vsel %vm427_vm1, 1.0, %v1304_v4  ;;  %vm424_vm4 = vmand %vm200_vm15, %vm384_vm14  ;;  %vm393_vm1 = vcmp.eq.s32.totalorder %v1520_v36, 1  ;;  %v880_v36 = vadd.f32 %v879_v60, %v878_v50  ;;  %vm386_vm0 = vcmp.eq.s32.totalorder %v1623_v30, 1 }
  0x89   :  { %vm425_vm5 = vmand %vm201_vm3, %vm384_vm14  ;;  %v488_v46 = vsel %vm424_vm4, 1.0, %v1304_v4  ;;  %v278_v30 = vsel %vm83_vm2, 1, %v1303_v2  ;;  %v943_v33 = vadd.f32 %v942_v19, %v941_v8 }
  0x8a   :  { %v489_v34 = vsel %vm425_vm5, 1.0, %v1304_v4  ;;  %v562_v49 = vadd.f32 %v490_v40, %v488_v46  ;;  %155 = vperm.xlu1 %1264, %v43_v12   ;;  %v881_v20 = vrot.slane %v880_v36, 2  ;;  %v904_v46 = vrot.slane %v903_v37, 1 }
  0x8b   :  { %v575_v51 = vadd.f32 %v491_v43, %v489_v34  ;;  %368 = vperm.xlu0 %1263, %v277_v25   ;;  %v944_v44 = vrot.slane %v943_v33, 2 }
  0x8c   :  { %v330_v56 = vpop.permute.xlu1 %329 }
  0x8d   :  { %347 = vperm.xlu2 %1265, %v270_v35   ;;  %vm392_vm12 = vcmp.eq.s32.totalorder %v330_v56, 1  ;;  %v141_v57 = vpop.permute.xlu0 %140  ;;  %v882_v35 = vadd.f32 %v881_v20, %v880_v36  ;;  %v945_v56 = vadd.f32 %v944_v44, %v943_v33 }
  0x8e   :  { %vm440_vm13 = vmand %vm216_vm10, %vm392_vm12  ;;  %vm218_vm14 = vcmp.eq.s32.totalorder %v141_v57, %v1502_v27  ;;  %vm219_vm15 = vcmp.eq.s32.totalorder %v141_v57, %v1512_v31 }
  0x8f   :  { %v1676_v58 = vpop.permute.xlu2 %143  ;;  %vm441_vm3 = vmand %vm217_vm11, %vm392_vm12  ;;  %v504_v26 = vsel %vm440_vm13, 1.0, %v1304_v4  ;;  %v946_v61 = vrot.slane %v945_v56, 1 }
  0x90   :  { %v505_v5 = vsel %vm441_vm3, 1.0, %v1304_v4  ;;  %vm442_vm4 = vmand %vm218_vm14, %vm393_vm1 }
  0x91   :  { %vm443_vm5 = vmand %vm219_vm15, %vm393_vm1  ;;  %v506_v63 = vsel %vm442_vm4, 1.0, %v1304_v4  ;;  %v947_v36 = vadd.f32 %v946_v61, %v945_v56 }
  0x92   :  { %v507_v1 = vsel %vm443_vm5, 1.0, %v1304_v4  ;;  %v1690_v7 = vadd.f32 %v506_v63, %v504_v26  ;;  %134 = vperm.xlu1 %1264, %v1609_v17   ;;  %v922_v17 = vadd.f32 %v921_v23, %v920_v11 }
  0x93   :  { %v1693_v9 = vadd.f32 %v507_v1, %v505_v5  ;;  %110 = vperm.xlu0 %1263, %v1598_v13   ;;  %v271_v13 = vsel %vm76_vm9, 1, %v1303_v2  ;;  %v279_v5 = vsel %vm84_vm6, 1, %v1303_v2  ;;  %v951_v2 = vmax.f32 %v947_v36, 1.0 }
  0x94   :  { %v120_v12 = vpop.permute.xlu1 %119  ;;  %v923_v47 = vrot.slane %v922_v17, 2  ;;  %vm221_vm6 = vcmp.eq.s32.totalorder %v1676_v58, %v1512_v31 }
  0x95   :  { %179 = vperm.xlu2 %1265, %v1637_v38   ;;  %vm204_vm10 = vcmp.eq.s32.totalorder %v120_v12, %v1502_v27  ;;  %vm205_vm11 = vcmp.eq.s32.totalorder %v120_v12, %v1512_v31  ;;  %v96_v14 = vpop.permute.xlu0 %95  ;;  %v883_v38 = vrot.slane %v882_v35, 1 }
  0x96   :  { %vm428_vm12 = vmand %vm204_vm10, %vm386_vm0  ;;  %vm188_vm8 = vcmp.eq.s32.totalorder %v96_v14, %v1502_v27  ;;  %vm189_vm7 = vcmp.eq.s32.totalorder %v96_v14, %v1512_v31  ;;  %v924_v55 = vadd.f32 %v923_v47, %v922_v17 }
  0x97   :  { %v123_v15 = vpop.permute.xlu2 %122  ;;  %vm429_vm13 = vmand %vm205_vm11, %vm386_vm0  ;;  %v492_v21 = vsel %vm428_vm12, 1.0, %v1304_v4  ;;  %v884_v54 = vadd.f32 %v883_v38, %v882_v35 }
  0x98   :  { %v493_v25 = vsel %vm429_vm13, 1.0, %v1304_v4  ;;  %v563_v28 = vadd.f32 %v562_v49, %v492_v21  ;;  %vm206_vm1 = vcmp.eq.s32.totalorder %v123_v15, %v1502_v27  ;;  %vm207_vm4 = vcmp.eq.s32.totalorder %v123_v15, %v1512_v31 }
  0x99   :  { %v576_v32 = vadd.f32 %v575_v51, %v493_v25  ;;  %v948_v60 = vmax.f32 %v884_v54, 1.0  ;;  %v925_v0 = vrot.slane %v924_v55, 1 }
  0x9a   :  { %326 = vperm.xlu1 %1264, %v263_v22  }
  0x9b   :  { %302 = vperm.xlu0 %1263, %v255_v29   ;;  %v926_v10 = vadd.f32 %v925_v0, %v924_v55 }
  0x9c   :  { %v288_v40 = vpop.permute.xlu1 %287 }
  0x9d   :  { %371 = vperm.xlu2 %1265, %v278_v30   ;;  %vm378_vm14 = vcmp.eq.s32.totalorder %v288_v40, 1  ;;  %v165_v41 = vpop.permute.xlu0 %164 }
  0x9e   :  { %vm412_vm2 = vmand %vm188_vm8, %vm378_vm14  ;;  %vm234_vm0 = vcmp.eq.s32.totalorder %v165_v41, %v1502_v27  ;;  %vm235_vm11 = vcmp.eq.s32.totalorder %v165_v41, %v1512_v31  ;;  %vm232_vm8 = vcmp.eq.s32.totalorder %v1567_v62, %v1502_v27 }
  0x9f   :  { %v315_v43 = vpop.permute.xlu2 %314  ;;  %vm413_vm3 = vmand %vm189_vm7, %vm378_vm14  ;;  %v476_v45 = vsel %vm412_vm2, 1.0, %v1304_v4  ;;  %vm233_vm7 = vcmp.eq.s32.totalorder %v1567_v62, %v1512_v31 }
  0xa0   :  { %vm387_vm15 = vcmp.eq.s32.totalorder %v315_v43, 1  ;;  %v477_v48 = vsel %vm413_vm3, 1.0, %v1304_v4  ;;  %v1721_v34 = vadd.f32 %v1604_v16, %v476_v45  ;;  %v905_v16 = vadd.f32 %v904_v46, %v903_v37 }
  0xa1   :  { %vm430_vm9 = vmand %vm206_vm1, %vm387_vm15  ;;  %v1724_v49 = vadd.f32 %v1612_v18, %v477_v48  ;;  %vm220_vm1 = vcmp.eq.s32.totalorder %v1676_v58, %v1502_v27 }
  0xa2   :  { %vm431_vm5 = vmand %vm207_vm4, %vm387_vm15  ;;  %v494_v50 = vsel %vm430_vm9, 1.0, %v1304_v4  ;;  %350 = vperm.xlu1 %1264, %v271_v13   ;;  %v949_v26 = vmax.f32 %v905_v16, 1.0 }
  0xa3   :  { %v495_v51 = vsel %vm431_vm5, 1.0, %v1304_v4  ;;  %v1728_v53 = vadd.f32 %v563_v28, %v494_v50  ;;  %158 = vperm.xlu0 %1263, %v1652_v42  }
  0xa4   :  { %v1730_v52 = vadd.f32 %v576_v32, %v495_v51  ;;  %v357_v18 = vpop.permute.xlu1 %356 }
  0xa5   :  { %182 = vperm.xlu2 %1265, %v1642_v39   ;;  %vm401_vm10 = vcmp.eq.s32.totalorder %v357_v18, 1  ;;  %v354_v57 = vpop.permute.xlu0 %353  ;;  %v950_v39 = vmax.f32 %v926_v10, 1.0 }
  0xa6   :  { %vm458_vm12 = vmand %vm234_vm0, %vm401_vm10  ;;  %vm400_vm13 = vcmp.eq.s32.totalorder %v354_v57, 1 }
  0xa7   :  { %v1735_v59 = vpop.permute.xlu2 %338  ;;  %vm459_vm14 = vmand %vm235_vm11, %vm401_vm10  ;;  %v522_v42 = vsel %vm458_vm12, 1.0, %v1304_v4 }
  0xa8   :  { %v523_v3 = vsel %vm459_vm14, 1.0, %v1304_v4  ;;  %vm456_vm2 = vmand %vm232_vm8, %vm400_vm13 }
  0xa9   :  { %vm457_vm15 = vmand %vm233_vm7, %vm400_vm13  ;;  %v520_v6 = vsel %vm456_vm2, 1.0, %v1304_v4 }
  0xaa   :  { %v521_v63 = vsel %vm457_vm15, 1.0, %v1304_v4  ;;  %v614_v1 = vadd.f32 %v522_v42, %v520_v6  ;;  %954 = vperm.xlu1 %1264, %v948_v60   ;;  %vm395_vm15 = vcmp.eq.s32.totalorder %v1735_v59, 1 }
  0xab   :  { %v627_v8 = vadd.f32 %v523_v3, %v521_v63  ;;  %374 = vperm.xlu0 %1263, %v279_v5  }
  0xac   :  { %v99_v62 = vpop.permute.xlu1 %98 }
  0xad   :  { %958 = vperm.xlu2 %1265, %v949_v26   ;;  %v336_v11 = vpop.permute.xlu0 %335  ;;  %vm190_vm5 = vcmp.eq.s32.totalorder %v99_v62, %v1502_v27  ;;  %vm191_vm10 = vcmp.eq.s32.totalorder %v99_v62, %v1512_v31 }
  0xae   :  { %vm394_vm3 = vcmp.eq.s32.totalorder %v336_v11, 1 }
  0xaf   :  { %v171_v12 = vpop.permute.xlu2 %170  ;;  %vm444_vm4 = vmand %vm220_vm1, %vm394_vm3 }
  0xb0   :  { %vm445_vm9 = vmand %vm221_vm6, %vm394_vm3  ;;  %v508_v14 = vsel %vm444_vm4, 1.0, %v1304_v4  ;;  %vm238_vm13 = vcmp.eq.s32.totalorder %v171_v12, %v1502_v27  ;;  %vm239_vm14 = vcmp.eq.s32.totalorder %v171_v12, %v1512_v31 }
  0xb1   :  { %v509_v15 = vsel %vm445_vm9, 1.0, %v1304_v4  ;;  %v589_v19 = vadd.f32 %v1690_v7, %v508_v14  ;;  %v1764_v7 = vld [vmem:[%s2202_s1] sm:$0xf]  ;;  %v1257_v14 = vld [vmem:[%s2203_s2 + $0x78] sm:$0xff] }
  0xb2   :  { %v602_v20 = vadd.f32 %v1693_v9, %v509_v15  ;;  %966 = vperm.xlu1 %1264, %v951_v2   ;;  %818 = vmatpush.bf16.msra.mxu1 %v1257_v14 }
  0xb3   :  { %962 = vperm.xlu0 %1263, %v950_v39   ;;  %v1249_v39 = vld [vmem:[%s2203_s2 + $0x38] sm:$0xff] }
  0xb4   :  { %v291_v21 = vpop.permute.xlu1 %290  ;;  %805 = vmatpush.bf16.msra.mxu0 %v1249_v39  ;;  %v1251_v39 = vld [vmem:[%s2203_s2 + $0x48] sm:$0xff] }
  0xb5   :  { %vm379_vm0 = vcmp.eq.s32.totalorder %v291_v21, 1  ;;  %v168_v22 = vpop.permute.xlu0 %167 }
  0xb6   :  { %vm414_vm11 = vmand %vm190_vm5, %vm379_vm0  ;;  %vm236_vm9 = vcmp.eq.s32.totalorder %v168_v22, %v1502_v27 }
  0xb7   :  { %v363_v23 = vpop.permute.xlu2 %362  ;;  %vm415_vm8 = vmand %vm191_vm10, %vm379_vm0  ;;  %v478_v58 = vsel %vm414_vm11, 1.0, %v1304_v4  ;;  %vm237_vm0 = vcmp.eq.s32.totalorder %v168_v22, %v1512_v31 }
  0xb8   :  { %vm403_vm12 = vcmp.eq.s32.totalorder %v363_v23, 1  ;;  %v479_v9 = vsel %vm415_vm8, 1.0, %v1304_v4  ;;  %v538_v24 = vadd.f32 %v1721_v34, %v478_v58 }
  0xb9   :  { %vm1769_vm7 = vmand %vm238_vm13, %vm403_vm12  ;;  %v551_v28 = vadd.f32 %v1724_v49, %v479_v9  ;;  %v1247_v9 = vld [vmem:[%s2203_s2 + $0x28] sm:$0xff] }
  0xba   :  { %vm1774_vm2 = vmand %vm239_vm14, %vm403_vm12  ;;  %1057 = vperm.xlu1 %1264, %v1764_v7   ;;  %v526_v38 = vsel %vm1769_vm7, 1.0, %v1304_v4 }
  0xbb   :  { %v527_v45 = vsel %vm1774_vm2, 1.0, %v1304_v4 }
  0xbc   :  { %v147_v30 = vpop.permute.xlu1 %146 }
  0xbd   :  { %vm222_vm1 = vcmp.eq.s32.totalorder %v147_v30, %v1502_v27  ;;  %vm223_vm3 = vcmp.eq.s32.totalorder %v147_v30, %v1512_v31  ;;  %v360_v32 = vpop.permute.xlu0 %359  ;;  %v1246_v30 = vld [vmem:[%s2203_s2 + $0x20] sm:$0xff] }
  0xbe   :  { %vm446_vm6 = vmand %vm222_vm1, %vm395_vm15  ;;  %vm402_vm4 = vcmp.eq.s32.totalorder %v360_v32, 1  ;;  %v1254_v32 = vld [vmem:[%s2203_s2 + $0x60] sm:$0xff] }
  0xbf   :  { %v1782_v33 = vpop.permute.xlu2 %104  ;;  %vm447_vm5 = vmand %vm223_vm3, %vm395_vm15  ;;  %v510_v35 = vsel %vm446_vm6, 1.0, %v1304_v4 }
  0xc0   :  { %v511_v17 = vsel %vm447_vm5, 1.0, %v1304_v4  ;;  %v590_v37 = vadd.f32 %v589_v19, %v510_v35  ;;  %vm460_vm10 = vmand %vm236_vm9, %vm402_vm4  ;;  %v1248_v19 = vld [vmem:[%s2203_s2 + $0x30] sm:$0xff] }
  0xc1   :  { %v603_v40 = vadd.f32 %v602_v20, %v511_v17  ;;  %vm461_vm11 = vmand %vm237_vm0, %vm402_vm4  ;;  %v524_v41 = vsel %vm460_vm10, 1.0, %v1304_v4  ;;  %v1256_v20 = vld [vmem:[%s2203_s2 + $0x70] sm:$0xff]  ;;  %806 = vmatpush.bf16.msra.mxu0 %v1248_v19 }
  0xc2   :  { %v525_v43 = vsel %vm461_vm11, 1.0, %v1304_v4  ;;  %v615_v13 = vadd.f32 %v614_v1, %v524_v41  ;;  %819 = vmatpush.bf16.msra.mxu1 %v1256_v20 }
  0xc3   :  { %v628_v44 = vadd.f32 %v627_v8, %v525_v43 }
  0xc4   :  { %v126_v46 = vpop.permute.xlu1 %125  ;;  %v1796_v47 = vadd.f32 %v615_v13, %v526_v38 }
  0xc5   :  { %v102_v48 = vpop.permute.xlu0 %101  ;;  %v1798_v34 = vadd.f32 %v628_v44, %v527_v45  ;;  %vm208_vm12 = vcmp.eq.s32.totalorder %v126_v46, %v1502_v27  ;;  %vm209_vm8 = vcmp.eq.s32.totalorder %v126_v46, %v1512_v31  ;;  %807 = vmatpush.bf16.msra.mxu0 %v1247_v9  ;;  %v1245_v46 = vld [vmem:[%s2203_s2 + $0x18] sm:$0xff] }
  0xc6   :  { %vm192_vm15 = vcmp.eq.s32.totalorder %v102_v48, %v1502_v27  ;;  %vm193_vm2 = vcmp.eq.s32.totalorder %v102_v48, %v1512_v31  ;;  %v1253_v48 = vld [vmem:[%s2203_s2 + $0x58] sm:$0xff] }
  0xc7   :  { %v297_v49 = vpop.permute.xlu2 %296 }
  0xc8   :  { %vm381_vm11 = vcmp.eq.s32.totalorder %v297_v49, 1 }
  0xc9   :  { %808 = vmatpush.bf16.msra.mxu0 %v1246_v30 }
  0xcc   :  { %v318_v50 = vpop.permute.xlu1 %317 }
  0xcd   :  { %vm388_vm13 = vcmp.eq.s32.totalorder %v318_v50, 1  ;;  %v294_v51 = vpop.permute.xlu0 %293  ;;  %809 = vmatpush.bf16.msra.mxu0 %v1245_v46 }
  0xce   :  { %vm432_vm14 = vmand %vm208_vm12, %vm388_vm13  ;;  %vm380_vm7 = vcmp.eq.s32.totalorder %v294_v51, 1  ;;  %vm194_vm12 = vcmp.eq.s32.totalorder %v1782_v33, %v1502_v27 }
  0xcf   :  { %vm433_vm1 = vmand %vm209_vm8, %vm388_vm13  ;;  %v496_v54 = vsel %vm432_vm14, 1.0, %v1304_v4  ;;  %v1816_v60 = vpop.permute.xlu2 %152  ;;  %vm195_vm8 = vcmp.eq.s32.totalorder %v1782_v33, %v1512_v31 }
  0xd0   :  { %v497_v56 = vsel %vm433_vm1, 1.0, %v1304_v4  ;;  %v1807_v16 = vadd.f32 %v1728_v53, %v496_v54  ;;  %vm416_vm3 = vmand %vm192_vm15, %vm380_vm7 }
  0xd1   :  { %v1810_v55 = vadd.f32 %v1730_v52, %v497_v56  ;;  %vm417_vm6 = vmand %vm193_vm2, %vm380_vm7  ;;  %v480_v18 = vsel %vm416_vm3, 1.0, %v1304_v4 }
  0xd2   :  { %v481_v57 = vsel %vm417_vm6, 1.0, %v1304_v4  ;;  %v1814_v59 = vadd.f32 %v538_v24, %v480_v18  ;;  %vm1858_vm14 = vmand %vm194_vm12, %vm381_vm11  ;;  %v1255_v24 = vld [vmem:[%s2203_s2 + $0x68] sm:$0xff] }
  0xd3   :  { %v1818_v61 = vadd.f32 %v551_v28, %v481_v57  ;;  %vm1862_vm15 = vmand %vm195_vm8, %vm381_vm11  ;;  %820 = vmatpush.bf16.msra.mxu1 %v1255_v24  ;;  %v482_v38 = vsel %vm1858_vm14, 1.0, %v1304_v4 }
  0xd4   :  { %v342_v42 = vpop.permute.xlu1 %341  ;;  %v483_v44 = vsel %vm1862_vm15, 1.0, %v1304_v4  ;;  %v540_v54 = vadd.f32 %v1814_v59, %v482_v38 }
  0xd5   :  { %vm396_vm4 = vcmp.eq.s32.totalorder %v342_v42, 1  ;;  %v150_v26 = vpop.permute.xlu0 %149  ;;  %v553_v57 = vadd.f32 %v1818_v61, %v483_v44 }
  0xd6   :  { %vm224_vm9 = vcmp.eq.s32.totalorder %v150_v26, %v1502_v27  ;;  %vm225_vm5 = vcmp.eq.s32.totalorder %v150_v26, %v1512_v31 }
  0xd7   :  { %vm448_vm0 = vmand %vm224_vm9, %vm396_vm4  ;;  %v132_v5 = vpop.permute.xlu2 %131  ;;  %821 = vmatpush.bf16.msra.mxu1 %v1254_v32 }
  0xd8   :  { %vm449_vm10 = vmand %vm225_vm5, %vm396_vm4  ;;  %v512_v53 = vsel %vm448_vm0, 1.0, %v1304_v4  ;;  %vm212_vm1 = vcmp.eq.s32.totalorder %v132_v5, %v1502_v27  ;;  %vm213_vm5 = vcmp.eq.s32.totalorder %v132_v5, %v1512_v31 }
  0xd9   :  { %v513_v52 = vsel %vm449_vm10, 1.0, %v1304_v4  ;;  %v1824_v0 = vadd.f32 %v590_v37, %v512_v53  ;;  %v1244_v53 = vld [vmem:[%s2203_s2 + $0x10] sm:$0xff] }
  0xda   :  { %v1826_v3 = vadd.f32 %v603_v40, %v513_v52  ;;  %v1252_v52 = vld [vmem:[%s2203_s2 + $0x50] sm:$0xff]  ;;  %810 = vmatpush.bf16.msra.mxu0 %v1244_v53 }
  0xdb   :  { %822 = vmatpush.bf16.msra.mxu1 %v1253_v48 }
  0xdc   :  { %v174_v6 = vpop.permute.xlu1 %173 }
  0xdd   :  { %v129_v63 = vpop.permute.xlu0 %128  ;;  %vm240_vm10 = vcmp.eq.s32.totalorder %v174_v6, %v1502_v27  ;;  %vm241_vm8 = vcmp.eq.s32.totalorder %v174_v6, %v1512_v31 }
  0xde   :  { %vm210_vm2 = vcmp.eq.s32.totalorder %v129_v63, %v1502_v27  ;;  %vm211_vm6 = vcmp.eq.s32.totalorder %v129_v63, %v1512_v31 }
  0xdf   :  { %v324_v8 = vpop.permute.xlu2 %323  ;;  %823 = vmatpush.bf16.msra.mxu1 %v1252_v52  ;;  %v1000_v52 = vld [vmem:[%s2204_s3 + $0x68] sm:$0xff] }
  0xe0   :  { %vm390_vm13 = vcmp.eq.s32.totalorder %v324_v8, 1 }
  0xe1   :  { %vm1875_vm3 = vmand %vm212_vm1, %vm390_vm13 }
  0xe2   :  { %vm1887_vm11 = vmand %vm213_vm5, %vm390_vm13  ;;  %vm226_vm13 = vcmp.eq.s32.totalorder %v1816_v60, %v1502_v27 }
  0xe3   :  { %v501_v42 = vsel %vm1887_vm11, 1.0, %v1304_v4  ;;  %824 = vmatpush.bf16.msra.mxu1 %v1251_v39 }
  0xe4   :  { %v366_v1 = vpop.permute.xlu1 %365 }
  0xe5   :  { %v321_v36 = vpop.permute.xlu0 %320  ;;  %vm404_vm4 = vcmp.eq.s32.totalorder %v366_v1, 1 }
  0xe6   :  { %vm389_vm7 = vcmp.eq.s32.totalorder %v321_v36, 1  ;;  %vm1908_vm1 = vmand %vm241_vm8, %vm404_vm4 }
  0xe7   :  { %v1830_v11 = vpop.permute.xlu2 %347  ;;  %vm1880_vm9 = vmand %vm210_vm2, %vm389_vm7 }
  0xe8   :  { %vm435_vm0 = vmand %vm211_vm6, %vm389_vm7  ;;  %v498_v40 = vsel %vm1880_vm9, 1.0, %v1304_v4  ;;  %vm227_vm6 = vcmp.eq.s32.totalorder %v1816_v60, %v1512_v31  ;;  %v500_v60 = vsel %vm1875_vm3, 1.0, %v1304_v4 }
  0xe9   :  { %vm1899_vm7 = vmand %vm240_vm10, %vm404_vm4  ;;  %v499_v41 = vsel %vm435_vm0, 1.0, %v1304_v4  ;;  %v566_v49 = vadd.f32 %v1807_v16, %v498_v40  ;;  %v529_v16 = vsel %vm1908_vm1, 1.0, %v1304_v4 }
  0xea   :  { %v579_v50 = vadd.f32 %v1810_v55, %v499_v41  ;;  %v528_v56 = vsel %vm1899_vm7, 1.0, %v1304_v4  ;;  %v2010_v6 = vadd.f32 %v1798_v34, %v529_v16  ;;  %v1002_v16 = vld [vmem:[%s2204_s3 + $0x78] sm:$0xff]  ;;  %v1001_v55 = vld [vmem:[%s2204_s3 + $0x70] sm:$0xff]  ;;  %v999_v34 = vld [vmem:[%s2204_s3 + $0x60] sm:$0xff] }
  0xeb   :  { %v2007_v5 = vadd.f32 %v1796_v47, %v528_v56  ;;  %v567_v36 = vadd.f32 %v566_v49, %v500_v60  ;;  %1007 = vmatpush.msra.mxu2 %v1002_v16 }
  0xec   :  { %v1828_v10 = vpop.permute.xlu1 %107  ;;  %v580_v8 = vadd.f32 %v579_v50, %v501_v42 }
  0xed   :  { %v345_v62 = vpop.permute.xlu0 %344  ;;  %vm196_vm9 = vcmp.eq.s32.totalorder %v1828_v10, %v1502_v27  ;;  %vm197_vm14 = vcmp.eq.s32.totalorder %v1828_v10, %v1512_v31  ;;  %1008 = vmatpush.msra.mxu2 %v1001_v55 }
  0xee   :  { %vm397_vm12 = vcmp.eq.s32.totalorder %v345_v62, 1 }
  0xef   :  { %v1842_v15 = vpop.permute.xlu2 %179  ;;  %vm1922_vm4 = vmand %vm226_vm13, %vm397_vm12  ;;  %1009 = vmatpush.msra.mxu2 %v1000_v52 }
  0xf0   :  { %vm1935_vm5 = vmand %vm227_vm6, %vm397_vm12  ;;  %vm244_vm10 = vcmp.eq.s32.totalorder %v1842_v15, %v1502_v27  ;;  %v514_v18 = vsel %vm1922_vm4, 1.0, %v1304_v4  ;;  %vm245_vm7 = vcmp.eq.s32.totalorder %v1842_v15, %v1512_v31 }
  0xf1   :  { %v515_v61 = vsel %vm1935_vm5, 1.0, %v1304_v4  ;;  %v592_v10 = vadd.f32 %v1824_v0, %v514_v18  ;;  %1010 = vmatpush.msra.mxu2 %v999_v34 }
  0xf2   :  { %v605_v0 = vadd.f32 %v1826_v3, %v515_v61 }
  0xf4   :  { %v1832_v12 = vpop.permute.xlu1 %299 }
  0xf5   :  { %v1834_v2 = vpop.permute.xlu0 %176  ;;  %vm382_vm2 = vcmp.eq.s32.totalorder %v1832_v12, 1  ;;  %v1243_v12 = vld [vmem:[%s2203_s2 + $0x8] sm:$0xff] }
  0xf6   :  { %vm1951_vm15 = vmand %vm196_vm9, %vm382_vm2  ;;  %811 = vmatpush.bf16.msra.mxu0 %v1243_v12 }
  0xf7   :  { %v372_v35 = vpop.permute.xlu2 %371  ;;  %vm1966_vm12 = vmand %vm197_vm14, %vm382_vm2  ;;  %vm398_vm2 = vcmp.eq.s32.totalorder %v1830_v11, 1  ;;  %v484_v47 = vsel %vm1951_vm15, 1.0, %v1304_v4  ;;  %vm242_vm15 = vcmp.eq.s32.totalorder %v1834_v2, %v1502_v27 }
  0xf8   :  { %vm406_vm0 = vcmp.eq.s32.totalorder %v372_v35, 1  ;;  %v485_v11 = vsel %vm1966_vm12, 1.0, %v1304_v4  ;;  %v541_v14 = vadd.f32 %v540_v54, %v484_v47  ;;  %v1242_v35 = vld [vmem:[%s2203_s2] sm:$0xff] }
  0xf9   :  { %vm1979_vm13 = vmand %vm244_vm10, %vm406_vm0  ;;  %v554_v20 = vadd.f32 %v553_v57, %v485_v11 }
  0xfa   :  { %vm1996_vm6 = vmand %vm245_vm7, %vm406_vm0  ;;  %v2074_v29 = vsel %vm1979_vm13, 1.0, %v1304_v4  ;;  %812 = vmatpush.bf16.msra.mxu0 %v1242_v35 }
  0xfb   :  { %v2079_v30 = vsel %vm1996_vm6, 1.0, %v1304_v4 }
  0xfc   :  { %v1850_v21 = vpop.permute.xlu1 %155 }
  0xfd   :  { %v1854_v22 = vpop.permute.xlu0 %368  ;;  %vm228_vm8 = vcmp.eq.s32.totalorder %v1850_v21, %v1502_v27  ;;  %vm229_vm1 = vcmp.eq.s32.totalorder %v1850_v21, %v1512_v31 }
  0xfe   :  { %vm2015_vm3 = vmand %vm228_vm8, %vm398_vm2  ;;  %vm405_vm10 = vcmp.eq.s32.totalorder %v1854_v22, 1 }
  0xff   :  { %vm2026_vm11 = vmand %vm229_vm1, %vm398_vm2  ;;  %v516_v21 = vsel %vm2015_vm3, 1.0, %v1304_v4  ;;  %v2081_v32 = vpop.permute.xlu2 %182 }
 0x100   :  { %v517_v37 = vsel %vm2026_vm11, 1.0, %v1304_v4  ;;  %v593_v40 = vadd.f32 %v592_v10, %v516_v21  ;;  %vm246_vm3 = vcmp.eq.s32.totalorder %v2081_v32, %v1502_v27 }
 0x101   :  { %v606_v50 = vadd.f32 %v605_v0, %v517_v37 }
 0x104   :  { %v1903_v17 = vpop.permute.xlu1 %134 }
 0x105   :  { %v1917_v43 = vpop.permute.xlu0 %110  ;;  %vm214_vm4 = vcmp.eq.s32.totalorder %v1903_v17, %v1502_v27  ;;  %vm215_vm5 = vcmp.eq.s32.totalorder %v1903_v17, %v1512_v31  ;;  %v1250_v17 = vld [vmem:[%s2203_s2 + $0x40] sm:$0xff] }
 0x106   :  { %vm198_vm8 = vcmp.eq.s32.totalorder %v1917_v43, %v1502_v27  ;;  %vm199_vm12 = vcmp.eq.s32.totalorder %v1917_v43, %v1512_v31  ;;  %825 = vmatpush.bf16.msra.mxu1 %v1250_v17 }
 0x10c   :  { %v327_v1 = vpop.permute.xlu1 %326 }
 0x10d   :  { %vm391_vm9 = vcmp.eq.s32.totalorder %v327_v1, 1  ;;  %v303_v62 = vpop.permute.xlu0 %302 }
 0x10e   :  { %vm438_vm0 = vmand %vm214_vm4, %vm391_vm9  ;;  %vm383_vm14 = vcmp.eq.s32.totalorder %v303_v62, 1  ;;  %vm243_vm4 = vcmp.eq.s32.totalorder %v1834_v2, %v1512_v31 }
 0x10f   :  { %vm439_vm7 = vmand %vm215_vm5, %vm391_vm9  ;;  %v502_v3 = vsel %vm438_vm0, 1.0, %v1304_v4 }
 0x110   :  { %v503_v15 = vsel %vm439_vm7, 1.0, %v1304_v4  ;;  %v568_v19 = vadd.f32 %v567_v36, %v502_v3  ;;  %vm422_vm1 = vmand %vm198_vm8, %vm383_vm14 }
 0x111   :  { %v581_v23 = vadd.f32 %v580_v8, %v503_v15  ;;  %vm423_vm2 = vmand %vm199_vm12, %vm383_vm14  ;;  %v486_v58 = vsel %vm422_vm1, 1.0, %v1304_v4  ;;  %vm698_vm1 = vcmask 1042434  }
 0x112   :  { %vm2066_vm9 = vmand %vm242_vm15, %vm405_vm10  ;;  %v569_v24 = vrot.slane %v568_v19, 4  ;;  %v487_v25 = vsel %vm423_vm2, 1.0, %v1304_v4  ;;  %v542_v28 = vadd.f32 %v541_v14, %v486_v58  ;;  %vm247_vm15 = vcmp.eq.s32.totalorder %v2081_v32, %v1512_v31  ;;  %v995_v32 = vld [vmem:[%s2204_s3 + $0x40] sm:$0xff] }
 0x113   :  { %v582_v2 = vrot.slane %v581_v23, 4  ;;  %v555_v33 = vadd.f32 %v554_v20, %v487_v25  ;;  %vm2094_vm13 = vmand %vm243_vm4, %vm405_vm10  ;;  %v530_v44 = vsel %vm2066_vm9, 1.0, %v1304_v4  ;;  %vm696_vm10 = vcmask 1041409  }
 0x114   :  { %v570_v43 = vadd.f32 %v569_v24, %v568_v19  ;;  %v543_v13 = vrot.slane %v542_v28, 4  ;;  %v351_v38 = vpop.permute.xlu1 %350  ;;  %v531_v51 = vsel %vm2094_vm13, 1.0, %v1304_v4  ;;  %v618_v18 = vadd.f32 %v2007_v5, %v530_v44 }
 0x115   :  { %v583_v45 = vadd.f32 %v582_v2, %v581_v23  ;;  %v556_v46 = vrot.slane %v555_v33, 4  ;;  %vm399_vm6 = vcmp.eq.s32.totalorder %v351_v38, 1  ;;  %v159_v48 = vpop.permute.xlu0 %158  ;;  %v631_v36 = vadd.f32 %v2010_v6, %v531_v51  ;;  %v998_v6 = vld [vmem:[%s2204_s3 + $0x58] sm:$0xff] }
 0x116   :  { %v571_v22 = vrot.slane %v570_v43, 2  ;;  %v544_v49 = vadd.f32 %v543_v13, %v542_v28  ;;  %vm230_vm11 = vcmp.eq.s32.totalorder %v159_v48, %v1502_v27  ;;  %vm231_vm5 = vcmp.eq.s32.totalorder %v159_v48, %v1512_v31  ;;  %v997_v28 = vld [vmem:[%s2204_s3 + $0x50] sm:$0xff]  ;;  %1011 = vmatpush.msra.mxu2 %v998_v6 }
 0x117   :  { %v584_v54 = vrot.slane %v583_v45, 2  ;;  %v557_v56 = vadd.f32 %v556_v46, %v555_v33  ;;  %vm454_vm0 = vmand %vm230_vm11, %vm399_vm6  ;;  %v619_v19 = vadd.f32 %v618_v18, %v2074_v29  ;;  %v632_v25 = vadd.f32 %v631_v36, %v2079_v30  ;;  %v996_v30 = vld [vmem:[%s2204_s3 + $0x48] sm:$0xff]  ;;  %v959_v46 = vpop.permute.xlu2 %958  ;;  %v994_v18 = vld [vmem:[%s2204_s3 + $0x38] sm:$0xff] }
 0x118   :  { %v572_v57 = vadd.f32 %v571_v22, %v570_v43  ;;  %v545_v59 = vrot.slane %v544_v49, 2  ;;  %vm455_vm14 = vmand %vm231_vm5, %vm399_vm6  ;;  %v518_v60 = vsel %vm454_vm0, 1.0, %v1304_v4  ;;  %1012 = vmatpush.msra.mxu2 %v997_v28  ;;  %vm700_vm2 = vcmask 1043459   ;;  %v992_v36 = vld [vmem:[%s2204_s3 + $0x28] sm:$0xff]  ;;  %v987_v28 = vld [vmem:[%s2204_s3] sm:$0xff] }
 0x119   :  { %v585_v42 = vadd.f32 %v584_v54, %v583_v45  ;;  %v558_v61 = vrot.slane %v557_v56, 2  ;;  %v519_v26 = vsel %vm455_vm14, 1.0, %v1304_v4  ;;  %v594_v53 = vadd.f32 %v593_v40, %v518_v60 }
 0x11a   :  { %v573_v5 = vrot.slane %v572_v57, 1  ;;  %v546_v63 = vadd.f32 %v545_v59, %v544_v49  ;;  %v607_v1 = vadd.f32 %v606_v50, %v519_v26  ;;  %1013 = vmatpush.msra.mxu2 %v996_v30  ;;  %vm1062_vm11 = vcmp.ne.s32.totalorder %v1764_v7, 4294967295 }
 0x11b   :  { %v586_v8 = vrot.slane %v585_v42, 1  ;;  %v559_v10 = vadd.f32 %v558_v61, %v557_v56  ;;  %v595_v47 = vrot.slane %v594_v53, 4 }
 0x11c   :  { %v574_v62 = vadd.f32 %v573_v5, %v572_v57  ;;  %v547_v0 = vrot.slane %v546_v63, 1  ;;  %v608_v11 = vrot.slane %v607_v1, 4  ;;  %v955_v3 = vpop.permute.xlu1 %954  ;;  %1014 = vmatpush.msra.mxu2 %v995_v32 }
 0x11d   :  { %v587_v12 = vadd.f32 %v586_v8, %v585_v42  ;;  %v560_v39 = vrot.slane %v559_v10, 1  ;;  %v596_v14 = vadd.f32 %v595_v47, %v594_v53  ;;  %v375_v15 = vpop.permute.xlu0 %374  ;;  %v968_v54 = vsel %vm696_vm10, %v959_v46, %v955_v3  ;;  %v993_v53 = vld [vmem:[%s2204_s3 + $0x30] sm:$0xff]  ;;  %v1266_v46 = vld [vmem:[%s2205_s4] ss:$0 sm:$0xff]  ;;  %s1305_s4 = smov [#allocation2]  }
 0x11e   :  { %v642_v20 = vpack.c.bf16 %v574_v62, %v574_v62  ;;  %v548_v21 = vadd.f32 %v547_v0, %v546_v63  ;;  %v609_v23 = vadd.f32 %v608_v11, %v607_v1  ;;  %vm407_vm8 = vcmp.eq.s32.totalorder %v375_v15, 1  ;;  %1015 = vmatpush.msra.mxu2 %v994_v18  ;;  %v991_v62 = vld [vmem:[%s2204_s3 + $0x20] sm:$0xff]  ;;  %s1130_s16 = sshll.u32 %s1305_s4, 4  ;;  %s1131_s16 = int_to_ptr.vmem [resolvable:$true] %s1130_s16 }
 0x11f   :  { %v643_v58 = vpack.c.bf16 %v587_v12, %v587_v12  ;;  %v561_v9 = vadd.f32 %v560_v39, %v559_v10  ;;  %v597_v24 = vrot.slane %v596_v14, 2  ;;  %vm470_vm7 = vmand %vm246_vm3, %vm407_vm8  ;;  %v990_v12 = vld [vmem:[%s2204_s3 + $0x18] sm:$0xff]  ;;  %vm1027_vm3 = vcmask 1043456  }
 0x120   :  { %v690_v29 = vunpack.c.l.b16 %v642_v20  ;;  %v640_v2 = vpack.c.bf16 %v548_v21, %v548_v21  ;;  %v610_v33 = vrot.slane %v609_v23, 2  ;;  %vm471_vm12 = vmand %vm247_vm15, %vm407_vm8  ;;  %v534_v35 = vsel %vm470_vm7, 1.0, %v1304_v4  ;;  %1016 = vmatpush.msra.mxu2 %v993_v53 }
 0x121   :  { %v691_v17 = vunpack.c.l.b16 %v643_v58  ;;  %v641_v37 = vpack.c.bf16 %v561_v9, %v561_v9  ;;  %v598_v40 = vadd.f32 %v597_v24, %v596_v14  ;;  %v535_v41 = vsel %vm471_vm12, 1.0, %v1304_v4  ;;  %v989_v24 = vld [vmem:[%s2204_s3 + $0x10] sm:$0xff] }
 0x122   :  { %v688_v43 = vunpack.c.l.b16 %v640_v2  ;;  %v611_v13 = vadd.f32 %v610_v33, %v609_v23  ;;  %v620_v38 = vadd.f32 %v619_v19, %v534_v35  ;;  %v633_v44 = vadd.f32 %v632_v25, %v535_v41  ;;  %1017 = vmatpush.msra.mxu2 %v992_v36  ;;  %v988_v25 = vld [vmem:[%s2204_s3 + $0x8] sm:$0xff] }
 0x123   :  { %v689_v45 = vunpack.c.l.b16 %v641_v37  ;;  %v599_v31 = vrot.slane %v598_v40, 1  ;;  %vm1071_vm8 = vcmask 3072  }
 0x124   :  { %v612_v48 = vrot.slane %v611_v13, 1  ;;  %v621_v22 = vrot.slane %v620_v38, 4  ;;  %v634_v49 = vrot.slane %v633_v44, 4  ;;  %v967_v50 = vpop.permute.xlu1 %966  ;;  %v697_v51 = vsel %vm696_vm10, %v690_v29, %v688_v43  ;;  %1018 = vmatpush.msra.mxu2 %v991_v62 }
 0x125   :  { %v963_v56 = vpop.permute.xlu0 %962  ;;  %v600_v16 = vadd.f32 %v599_v31, %v598_v40  ;;  %v702_v55 = vsel %vm696_vm10, %v691_v17, %v689_v45 }
 0x126   :  { %v622_v57 = vadd.f32 %v621_v22, %v620_v38  ;;  %v635_v59 = vadd.f32 %v634_v49, %v633_v44  ;;  %v969_v60 = vsel %vm698_vm1, %v963_v56, %v968_v54  ;;  %v613_v42 = vadd.f32 %v612_v48, %v611_v13  ;;  %1019 = vmatpush.msra.mxu2 %v990_v12 }
 0x127   :  { %v970_v61 = vsel %vm700_vm2, %v967_v50, %v969_v60  ;;  %v644_v26 = vpack.c.bf16 %v600_v16, %v600_v16 }
 0x128   :  { %v623_v52 = vrot.slane %v622_v57, 2  ;;  %v636_v5 = vrot.slane %v635_v59, 2  ;;  %v645_v63 = vpack.c.bf16 %v613_v42, %v613_v42  ;;  %1020 = vmatpush.msra.mxu2 %v989_v24  ;;  %1267 = vrcp.f32 %v970_v61 }
 0x129   :  { %v692_v1 = vunpack.c.l.b16 %v644_v26  ;;  %v983_v37 = vand.u32 2147483648, %v970_v61  ;;  %vm977_vm9 = vweird.f32 %v970_v61  ;;  %v981_v40 = vand.u32 2147483647, %v970_v61 }
 0x12a   :  { %v624_v8 = vadd.f32 %v623_v52, %v622_v57  ;;  %v637_v10 = vadd.f32 %v636_v5, %v635_v59  ;;  %v693_v47 = vunpack.c.l.b16 %v645_v63  ;;  %1021 = vmatpush.msra.mxu2 %v988_v25 }
 0x12b   :  { %v699_v34 = vsel %vm698_vm1, %v692_v1, %v697_v51  ;;  %v984_v13 = vor.u32 1.1754944e-38, %v983_v37  ;;  %vm982_vm6 = vcmp.eq.f32.partialorder %v981_v40, 8.507059e+37 }
 0x12c   :  { %v625_v0 = vrot.slane %v624_v8, 1  ;;  %v638_v11 = vrot.slane %v637_v10, 1  ;;  %v703_v3 = vsel %vm698_vm1, %v693_v47, %v702_v55  ;;  %1022 = vmatpush.msra.mxu2 %v987_v28  ;;  %v1241_v55 = vsel %vm1062_vm11, 1.0, %v1304_v4  ;;  %v1058_v57 = vpop.permute.xlu1 %1057 }
 0x12d   :  { %vm1059_vm5 = vcmp.eq.s32.totalorder %v1502_v27, %v1058_v57 }
 0x12e   :  { %v626_v39 = vadd.f32 %v625_v0, %v624_v8  ;;  %v639_v14 = vadd.f32 %v638_v11, %v637_v10  ;;  %v1268_v29 = vpop.eup %1267  ;;  %v1240_v5 = vsel %vm1059_vm5, 1.0, %v1304_v4  ;;  %v1079_v0 = vsel %vm1071_vm8, %v1241_v55, 0.0 }
 0x12f   :  { %v973_v2 = vmul.f32 %v1268_v29, %v970_v61  ;;  %vm978_vm4 = vweird.f32 %v1268_v29  ;;  %v1080_v4 = vrot.slane %v1079_v0, 4 }
 0x130   :  { %v646_v15 = vpack.c.bf16 %v626_v39, %v626_v39  ;;  %v647_v19 = vpack.c.bf16 %v639_v14, %v639_v14  ;;  %vm979_vm13 = vmor %vm977_vm9, %vm978_vm4  ;;  %vm1104_vm4 = vcmp.eq.s32.totalorder %v1502_v27, 2  ;;  %vm1103_vm9 = vcmp.eq.s32.totalorder %v1502_v27, 1 }
 0x131   :  { %v974_v33 = vsub.f32 1.0, %v973_v2  ;;  %v1081_v11 = vadd.f32 %v1080_v4, %v1079_v0 }
 0x132   :  { %v694_v6 = vunpack.c.l.b16 %v646_v15  ;;  %v695_v20 = vunpack.c.l.b16 %v647_v19 }
 0x133   :  { %v975_v35 = vmul.f32 %v1268_v29, %v974_v33 }
 0x134   :  { %v701_v21 = vsel %vm700_vm2, %v694_v6, %v699_v34  ;;  %v704_v23 = vsel %vm700_vm2, %v695_v20, %v703_v3  ;;  %v1082_v3 = vrot.slane %v1081_v11, 2 }
 0x135   :  { %v705_v58 = vpack.c.b16 %v701_v21, %v701_v21  ;;  %v706_v9 = vpack.c.b16 %v704_v23, %v704_v23  ;;  %v976_v17 = vadd.f32 %v1268_v29, %v975_v35 }
 0x136   :  { %v1083_v12 = vadd.f32 %v1082_v3, %v1081_v11 }
 0x137   :  { %813 = vmatmul.bf16.vlgmr.msra.gmra.mxu0 %v705_v58  ;;  %826 = vmatmul.bf16.vlgmr.msra.gmra.mxu1 %v706_v9  ;;  %v980_v41 = vsel %vm979_vm13, %v1268_v29, %v976_v17  ;;  %vm1102_vm13 = vcmp.eq.s32.totalorder %v1502_v27, 0 }
 0x138   :  { %v985_v44 = vsel %vm982_vm6, %v984_v13, %v980_v41  ;;  %v1084_v39 = vrot.slane %v1083_v12, 1 }
 0x13a   :  { %v1085_v14 = vadd.f32 %v1084_v39, %v1083_v12 }
 0x13c   :  { %v1086_v15 = vmax.f32 %v1085_v14, 1.0 }
 0x13e   :  { %vm1092_vm7 = vweird.f32 %v1086_v15  ;;  %v1098_v28 = vand.u32 2147483648, %v1086_v15  ;;  %v1096_v33 = vand.u32 2147483647, %v1086_v15 }
 0x140   :  { %v1099_v17 = vor.u32 1.1754944e-38, %v1098_v28  ;;  %vm1097_vm2 = vcmp.eq.f32.partialorder %v1096_v33, 8.507059e+37 }
 0x1b4   :  { %v814_v30 = vpop.f32.mrf.mxu0  ;;  %v827_v43 = vpop.f32.mrf.mxu1 }
 0x1b5   :  { %v828_v38 = vadd.f32 %v827_v43, %v814_v30 }
 0x1b7   :  { %v986_v45 = vmul.f32 %v985_v44, %v828_v38 }
 0x1b9   :  { %1023 = vmatmul.f32.vlgmr.msra.gmra.mxu2 %v986_v45 }
 0x1bc   :  { %v816_v31 = vpop.f32.mrf.mxu0  ;;  %v829_v32 = vpop.f32.mrf.mxu1 }
 0x23c   :  { %v1024_v48 = vpop.f32.mrf.mxu2 }
 0x23d   :  { %v1025_v22 = vadd.f32 %v1266_v46, %v1024_v48 }
 0x23f   :  { %v1028_v49 = vsel %vm1027_vm3, %v1025_v22, -inf }
 0x240   :  { %1029 = vmax.xlane.f32.xlu2 %v1028_v49 }
 0x2b3   :  { %v1030_v50 = vpop.xlane.xlu2 %1029 }
 0x2b4   :  { %v1031_v51 = vsub.f32 %v1025_v22, %v1030_v50 }
 0x2b6   :  { %v1032_v54 = vmul.f32 1.442695, %v1031_v51 }
 0x2b8   :  { %1269 = vpow2.f32 %v1032_v54 }
 0x2be   :  { %v1270_v56 = vpop.eup %1269 }
 0x2bf   :  { %v1034_v16 = vsel %vm1027_vm3, %v1270_v56, 0.0 }
 0x2c0   :  { %1035 = vadd.xlane.f32.xlu0 %v1034_v16 }
 0x2d4   :  { %1113 = vperm.xlu0 %1263, %v1241_v55  }
 0x333   :  { %v1036_v18 = vpop.xlane.xlu0 %1035 }
 0x334   :  { %1271 = vrcp.f32 %v1036_v18  ;;  %v1048_v53 = vand.u32 2147483648, %v1036_v18  ;;  %v1046_v7 = vand.u32 2147483647, %v1036_v18  ;;  %vm1042_vm14 = vweird.f32 %v1036_v18 }
 0x335   :  { %1273 = vlog2.f32 %v1036_v18 }
 0x336   :  { %v1049_v8 = vor.u32 1.1754944e-38, %v1048_v53  ;;  %vm1047_vm10 = vcmp.eq.f32.partialorder %v1046_v7, 8.507059e+37  ;;  %1275 = vrcp.f32 %v1086_v15 }
 0x33a   :  { %v1272_v59 = vpop.eup %1271 }
 0x33b   :  { %v1274_v60 = vpop.eup %1273  ;;  %v1038_v42 = vmul.f32 %v1272_v59, %v1036_v18  ;;  %vm1043_vm0 = vweird.f32 %v1272_v59 }
 0x33c   :  { %v1054_v61 = vmul.f32 0.6931472, %v1274_v60  ;;  %vm1044_vm15 = vmor %vm1042_vm14, %vm1043_vm0  ;;  %v1276_v19 = vpop.eup %1275 }
 0x33d   :  { %v1039_v26 = vsub.f32 1.0, %v1038_v42  ;;  %v1088_v6 = vmul.f32 %v1276_v19, %v1086_v15  ;;  %vm1093_vm12 = vweird.f32 %v1276_v19 }
 0x33e   :  { %v1055_v52 = vsub.f32 %v1031_v51, %v1054_v61  ;;  %vm1094_vm1 = vmor %vm1092_vm7, %vm1093_vm12 }
 0x33f   :  { %v1040_v63 = vmul.f32 %v1272_v59, %v1039_v26  ;;  %v1089_v21 = vsub.f32 1.0, %v1088_v6 }
 0x340   :  { %v1065_v1 = vmul.f32 %v1240_v5, %v1055_v52 }
 0x341   :  { %v1041_v36 = vadd.f32 %v1272_v59, %v1040_v63  ;;  %v1090_v9 = vmul.f32 %v1276_v19, %v1089_v21 }
 0x342   :  { %v1066_v10 = vsel %vm1027_vm3, %v1065_v1, 0.0 }
 0x343   :  { %v1045_v47 = vsel %vm1044_vm15, %v1272_v59, %v1041_v36  ;;  %1067 = vadd.xlane.f32.xlu1 %v1066_v10  ;;  %v1091_v2 = vadd.f32 %v1276_v19, %v1090_v9 }
 0x344   :  { %v1050_v34 = vsel %vm1047_vm10, %v1049_v8, %v1045_v47 }
 0x345   :  { %v1051_v62 = vmul.f32 %v1270_v56, %v1050_v34  ;;  %v1095_v40 = vsel %vm1094_vm1, %v1276_v19, %v1091_v2 }
 0x346   :  { %v1100_v30 = vsel %vm1097_vm2, %v1099_v17, %v1095_v40  ;;  %v1114_v45 = vpop.permute.xlu0 %1113 }
 0x347   :  { %1123 = vst [vmem:[#allocation2] sm:$0xf] %v1051_v62 }
 0x3b6   :  { %v1068_v20 = vpop.xlane.xlu1 %1067 }
 0x3b7   :  { %v1069_v23 = vsub.f32 0.0, %v1068_v20 }
 0x3b9   :  { %v1070_v58 = vmul.f32 %v1241_v55, %v1069_v23 }
 0x3bb   :  { %v1072_v24 = vsel %vm1071_vm8, %v1070_v58, 0.0  ;;  %1119 = vperm.xlu1 %1264, %v1070_v58  }
 0x3bc   :  { %v1073_v25 = vrot.slane %v1072_v24, 4 }
 0x3be   :  { %v1074_v29 = vadd.f32 %v1073_v25, %v1072_v24 }
 0x3c0   :  { %v1075_v35 = vrot.slane %v1074_v29, 2 }
 0x3c2   :  { %v1076_v37 = vadd.f32 %v1075_v35, %v1074_v29 }
 0x3c4   :  { %v1077_v41 = vrot.slane %v1076_v37, 1 }
 0x3c6   :  { %v1078_v43 = vadd.f32 %v1077_v41, %v1076_v37 }
 0x3c8   :  { %v1101_v13 = vmul.f32 %v1100_v30, %v1078_v43 }
 0x3ca   :  { %1107 = vperm.xlu2 %1265, %v1101_v13  }
 0x424   :  { %v1108_v38 = vpop.permute.xlu2 %1107 }
 0x425   :  { %v1110_v44 = vsel %vm1104_vm4, %v1108_v38, 0.0 }
 0x426   :  { %v1116_v31 = vsel %vm1103_vm9, %v1114_v45, %v1110_v44 }
 0x42d   :  { %v1120_v32 = vpop.permute.xlu1 %1119 }
 0x42e   :  { %v1122_v46 = vsel %vm1102_vm13, %v1120_v32, %v1116_v31 }
 0x42f   :  { %1125 = vst [vmem:[#allocation2 + $0x4] sm:$0xf] %v1122_v46 }
 0x430   :  { %1138 = dma.vmem_to_hbm [thread:$0]  %s1131_s16, 128, %s1133_s19, [#allocation3], %s1306_s20, %s1306_s20, %s1307_s21  }
 0x431   :  { %1301 = dma.done.wait [#allocation3], 128  }
 0x432   :  { %1302 = vsyncadd [#allocation3], 4294967168 }
 0x433   :  { %1143 = vsyncpa [#allocation3], 1 }

</bundles_post_ra>
